<compile_context>
chip_gen: v7x
topology: tpu7x:2x2x1
jax: 0.10.0
libtpu: 0.0.40
codegen_flags: <defaults>
</compile_context>

<pallas_src>
import functools
import math

import numpy as np
import jax
import jax.numpy as jnp
from jax import lax
from jax.experimental import pallas as pl
from jax.experimental.pallas import tpu as pltpu


# ----------------------------------------------------------------------------
# RoFormer sinusoidal table (numpy, same construction as the PyTorch helper)
# ----------------------------------------------------------------------------
def roformer_sinusoidal_table(num_positions, embedding_dim):
    n_pos, dim = num_positions, embedding_dim
    position_enc = np.array(
        [[pos / np.power(10000, 2 * (j // 2) / dim) for j in range(dim)]
         for pos in range(n_pos)])
    out = np.zeros((n_pos, dim), dtype=np.float32)
    sentinel = dim // 2 if dim % 2 == 0 else dim // 2 + 1
    out[:, 0:sentinel] = np.sin(position_enc[:, 0::2])
    out[:, sentinel:] = np.cos(position_enc[:, 1::2])
    return jnp.asarray(out)


# ----------------------------------------------------------------------------
# Kernel 1: merged fused dense projection for both input streams
#   acc = x_tile @ W_cat + b_cat ; slab writes: [Q_even | Q_odd | K_even | K_odd | V]
# ----------------------------------------------------------------------------
def _dense_kernel(x_ref, w_ref, b_ref, q1_ref, q2_ref, k1_ref, k2_ref, v_ref, *, ahh):
    acc = jnp.dot(x_ref[0], w_ref[0], preferred_element_type=jnp.float32)
    acc = acc + b_ref[0].astype(jnp.float32)           # (1, Ntot) row-broadcast
    q1_ref[0] = acc[:, 0 * ahh:1 * ahh].astype(q1_ref.dtype)
    q2_ref[0] = acc[:, 1 * ahh:2 * ahh].astype(q2_ref.dtype)
    k1_ref[0] = acc[:, 2 * ahh:3 * ahh].astype(k1_ref.dtype)
    k2_ref[0] = acc[:, 3 * ahh:4 * ahh].astype(k2_ref.dtype)
    v_ref[0] = acc[:, 4 * ahh:].astype(v_ref.dtype)


# ----------------------------------------------------------------------------
# Kernel 2: RoPE + masked-softmax attention, all heads per (branch, batch) step
# ----------------------------------------------------------------------------
def _rope_attn_kernel(q1_ref, q2_ref, k1_ref, k2_ref, v_ref, sin_ref, cos_ref,
                      bias_ref, o_ref, *, scale, num_heads, dh2, dv):
    f32 = jnp.float32
    sin = sin_ref[...].astype(f32)          # (S, H*dh2) head-tiled sin
    cos = cos_ref[...].astype(f32)
    q1 = q1_ref[0].astype(f32)              # (S, H*dh2) even components, head-major
    q2 = q2_ref[0].astype(f32)              # (S, H*dh2) odd  components
    k1 = k1_ref[0].astype(f32)
    k2 = k2_ref[0].astype(f32)
    v = v_ref[0].astype(f32)                # (S, H*dv)
    bias = bias_ref[0].astype(f32)          # (1, S) mask bias

    # Full-width RoPE rotation — all heads at once on the VPU.
    qa = q1 * cos - q2 * sin
    qb = q2 * cos + q1 * sin
    ka = k1 * cos - k2 * sin
    kb = k2 * cos + k1 * sin

    # rot(q) @ rot(k)^T  ==  qa @ ka^T + qb @ kb^T  (per head, K = dh/2 each)
    dn = (((1,), (1,)), ((), ()))
    ctx_cols = []
    for h in range(num_heads):              # static slices → zero-cost views
        c0, c1 = h * dh2, (h + 1) * dh2
        scores = lax.dot_general(qa[:, c0:c1], ka[:, c0:c1], dn,
                                 preferred_element_type=f32)
        scores = scores + lax.dot_general(qb[:, c0:c1], kb[:, c0:c1], dn,
                                          preferred_element_type=f32)
        scores = scores * scale + bias      # (S, S) + (1, S)

        # TODO(synk): attention dropout is a no-op here (inference/eval semantics).
        m = jnp.max(scores, axis=-1, keepdims=True)
        p = jnp.exp(scores - m)
        denom = jnp.sum(p, axis=-1, keepdims=True)
        probs = p * pl.reciprocal(denom, approx=True)   # EUP slot, ~free

        ctx_cols.append(jnp.dot(probs, v[:, h * dv:(h + 1) * dv],
                                preferred_element_type=f32))

    # Lane-dense (S, H*dv) slab straight into the final output layout.
    o_ref[0, 0] = jnp.concatenate(ctx_cols, axis=-1).astype(o_ref.dtype)


# ----------------------------------------------------------------------------
# Full module forward
# ----------------------------------------------------------------------------
def i_s_self_attention(intent, slot, mask, params, rope_table, *, num_heads=12):
    """intent, slot: [B, S, Din]; mask: [B, S] of 0/1; params: PyTorch-layout
       weights ([out, in]) and biases; rope_table: [max_seq_len, head_dim]."""
    B, S, Din = intent.shape
    AH = params["wq"].shape[0]          # all_head_size
    OUT = params["wv"].shape[0]         # out_size
    dh = AH // num_heads                # q/k head dim (must be even for RoPE)
    dh2 = dh // 2
    AHH = num_heads * dh2               # = AH // 2
    dv = OUT // num_heads               # v head dim
    scale = 1.0 / math.sqrt(dh)
    M = B * S
    dtype = intent.dtype

    # --- bake the RoPE even/odd de-interleave into the weight column order ----
    # per head: even components (x1) first, then odd (x2); heads packed head-major.
    idx = np.arange(AH).reshape(num_heads, dh)
    perm = np.concatenate([idx[:, 0::2].reshape(-1), idx[:, 1::2].reshape(-1)])

    def qk_w(w):                         # [out, in] torch layout → [Din, AH] permuted
        return jnp.asarray(w).T[:, perm]

    def qk_b(b):
        return jnp.asarray(b)[perm]

    # stream 0: intent → [query | key_slot | value_slot]
    # stream 1: slot   → [query_slot | key | value]
    w0 = jnp.concatenate([qk_w(params["wq"]), qk_w(params["wk_s"]), params["wv_s"].T], axis=1)
    b0 = jnp.concatenate([qk_b(params["bq"]), qk_b(params["bk_s"]), params["bv_s"]])
    w1 = jnp.concatenate([qk_w(params["wq_s"]), qk_w(params["wk"]), params["wv"].T], axis=1)
    b1 = jnp.concatenate([qk_b(params["bq_s"]), qk_b(params["bk"]), params["bv"]])
    w_all = jnp.stack([w0, w1])                       # [2, Din, Ntot]
    b_all = jnp.stack([b0, b1])[:, None, :]           # [2, 1, Ntot]
    x_all = jnp.stack([intent.reshape(M, Din), slot.reshape(M, Din)])   # [2, M, Din]
    Ntot = 2 * AH + OUT

    # Row tile: big tiles amortize per-step overhead; cap at 256 to stay inside
    # the smallest (v7x, 64 MiB) VMEM budget with double-buffering headroom.
    tm = min(256, M) if (M % 8 == 0) else M           # block == full dim also legal
    grid_m = pl.cdiv(M, tm)

    q1, q2, k1, k2, v = pl.pallas_call(
        functools.partial(_dense_kernel, ahh=AHH),
        out_shape=(
            jax.ShapeDtypeStruct((2, M, AHH), dtype),   # Q even
            jax.ShapeDtypeStruct((2, M, AHH), dtype),   # Q odd
            jax.ShapeDtypeStruct((2, M, AHH), dtype),   # K even
            jax.ShapeDtypeStruct((2, M, AHH), dtype),   # K odd
            jax.ShapeDtypeStruct((2, M, OUT), dtype),   # V
        ),
        grid_spec=pltpu.PrefetchScalarGridSpec(
            num_scalar_prefetch=0,
            grid=(2, grid_m),
            in_specs=[
                pl.BlockSpec((1, tm, Din), lambda s, i: (s, i, 0)),
                pl.BlockSpec((1, Din, Ntot), lambda s, i: (s, 0, 0)),
                pl.BlockSpec((1, 1, Ntot), lambda s, i: (s, 0, 0)),
            ],
            out_specs=(
                pl.BlockSpec((1, tm, AHH), lambda s, i: (s, i, 0)),
                pl.BlockSpec((1, tm, AHH), lambda s, i: (s, i, 0)),
                pl.BlockSpec((1, tm, AHH), lambda s, i: (s, i, 0)),
                pl.BlockSpec((1, tm, AHH), lambda s, i: (s, i, 0)),
                pl.BlockSpec((1, tm, OUT), lambda s, i: (s, i, 0)),
            ),
        ),
        compiler_params=pltpu.CompilerParams(
            dimension_semantics=("parallel", "parallel"),
            vmem_limit_bytes=32 * 1024 * 1024),
    )(x_all, w_all, b_all)

    # Head-tiled sin/cos tables (tiny constants, built once in the wrapper).
    sin_h = jnp.tile(rope_table[:S, :dh2], (1, num_heads))     # (S, AHH)
    cos_h = jnp.tile(rope_table[:S, dh2:dh], (1, num_heads))
    bias = ((1.0 - mask.astype(jnp.float32)) * -10000.0).reshape(B, 1, S)

    # branch 0 = intent attention (q from stream 0, k/v from stream 1)
    # branch 1 = slot   attention (q from stream 1, k/v from stream 0)
    kernel = functools.partial(_rope_attn_kernel, scale=scale,
                               num_heads=num_heads, dh2=dh2, dv=dv)
    ctx = pl.pallas_call(
        kernel,
        out_shape=jax.ShapeDtypeStruct((2, B, S, OUT), dtype),
        grid_spec=pltpu.PrefetchScalarGridSpec(
            num_scalar_prefetch=0,
            grid=(2, B),
            in_specs=[
                pl.BlockSpec((1, S, AHH), lambda r, b: (r, b, 0)),       # q even
                pl.BlockSpec((1, S, AHH), lambda r, b: (r, b, 0)),       # q odd
                pl.BlockSpec((1, S, AHH), lambda r, b: (1 - r, b, 0)),   # k even
                pl.BlockSpec((1, S, AHH), lambda r, b: (1 - r, b, 0)),   # k odd
                pl.BlockSpec((1, S, OUT), lambda r, b: (1 - r, b, 0)),   # v
                pl.BlockSpec((S, AHH), lambda r, b: (0, 0)),             # sin (tiled)
                pl.BlockSpec((S, AHH), lambda r, b: (0, 0)),             # cos (tiled)
                pl.BlockSpec((1, 1, S), lambda r, b: (b, 0, 0)),         # mask bias
            ],
            out_specs=pl.BlockSpec((1, 1, S, OUT), lambda r, b: (r, b, 0, 0)),
        ),
        compiler_params=pltpu.CompilerParams(
            dimension_semantics=("parallel", "parallel"),
            vmem_limit_bytes=32 * 1024 * 1024),
    )(q1, q2, k1, k2, v, sin_h, cos_h, bias)

    # PyTorch returns (context_layer [slot branch], context_layer_intent [intent branch])
    return ctx[1], ctx[0]


# ----------------------------------------------------------------------------
# Pure-JAX reference mirroring the PyTorch module
# ----------------------------------------------------------------------------
def _reference(intent, slot, mask, p, num_heads, head_size, out_size, table):
    hp = lax.Precision.HIGHEST

    def dense(x, w, b):
        return jnp.einsum("bsi,oi->bso", x, w, precision=hp) + b

    def split(x):
        B, S, D = x.shape
        return x.reshape(B, S, num_heads, D // num_heads).transpose(0, 2, 1, 3)

    q_i = split(dense(intent, p["wq"], p["bq"]))
    k_i = split(dense(slot, p["wk"], p["bk"]))
    v_i = split(dense(slot, p["wv"], p["bv"]))
    q_s = split(dense(slot, p["wq_s"], p["bq_s"]))
    k_s = split(dense(intent, p["wk_s"], p["bk_s"]))
    v_s = split(dense(intent, p["wv_s"], p["bv_s"]))

    sin = table[None, None, :, : head_size // 2]
    cos = table[None, None, :, head_size // 2: head_size]

    def roemb(x):
        x1, x2 = x[..., 0::2], x[..., 1::2]
        return jnp.concatenate([x1 * cos - x2 * sin, x2 * cos + x1 * sin], axis=-1)

    q_i, q_s, k_i, k_s = roemb(q_i), roemb(q_s), roemb(k_i), roemb(k_s)

    bias = (1.0 - mask.astype(jnp.float32))[:, None, None, :] * -10000.0

    def attn(q, k, v):
        s = jnp.einsum("bhqd,bhkd->bhqk", q, k, precision=hp) / math.sqrt(head_size)
        pr = jax.nn.softmax(s + bias, axis=-1)
        c = jnp.einsum("bhqk,bhkd->bhqd", pr, v, precision=hp)
        B, H, S, dv = c.shape
        return c.transpose(0, 2, 1, 3).reshape(B, S, H * dv)

    return attn(q_s, k_s, v_s), attn(q_i, k_i, v_i)   # (slot branch, intent branch)


# ----------------------------------------------------------------------------
if __name__ == "__main__":
    # Small shapes consistent with the module (hidden/out divisible by 12 heads).
    B, S = 2, 8
    INPUT, HIDDEN, OUT = 32, 48, 48
    NUM_HEADS = 12
    HEAD = HIDDEN // NUM_HEADS           # 4
    MAX_SEQ = S

    key = jax.random.PRNGKey(0)
    ks = jax.random.split(key, 16)

    intent = jax.random.normal(ks[0], (B, S, INPUT), dtype=jnp.float32)
    slot = jax.random.normal(ks[1], (B, S, INPUT), dtype=jnp.float32)
    mask = jnp.array([[1, 1, 1, 1, 1, 1, 1, 1],
                      [1, 1, 1, 1, 1, 0, 0, 0]], dtype=jnp.float32)

    def lin(kw, kb, out_dim, in_dim):
        w = jax.random.normal(kw, (out_dim, in_dim), dtype=jnp.float32) * 0.05
        b = jax.random.normal(kb, (out_dim,), dtype=jnp.float32) * 0.05
        return w, b

    params = {}
    params["wq"], params["bq"] = lin(ks[2], ks[3], HIDDEN, INPUT)      # query
    params["wq_s"], params["bq_s"] = lin(ks[4], ks[5], HIDDEN, INPUT)  # query_slot
    params["wk"], params["bk"] = lin(ks[6], ks[7], HIDDEN, INPUT)      # key
    params["wk_s"], params["bk_s"] = lin(ks[8], ks[9], HIDDEN, INPUT)  # key_slot
    params["wv"], params["bv"] = lin(ks[10], ks[11], OUT, INPUT)       # value
    params["wv_s"], params["bv_s"] = lin(ks[12], ks[13], OUT, INPUT)   # value_slot

    table = roformer_sinusoidal_table(MAX_SEQ, HEAD)

    fwd = jax.jit(functools.partial(i_s_self_attention, num_heads=NUM_HEADS))
    out_slot, out_intent = fwd(intent, slot, mask, params, table)
    out_slot = jax.block_until_ready(out_slot)
    out_intent = jax.block_until_ready(out_intent)

    ref_slot, ref_intent = _reference(intent, slot, mask, params,
                                      NUM_HEADS, HEAD, OUT, table)

    assert out_slot.shape == (B, S, OUT) and out_intent.shape == (B, S, OUT)
    # Tolerance accounts for the EUP approximate reciprocal in the softmax denom.
    assert jnp.allclose(out_slot, ref_slot, atol=2e-3, rtol=1e-2), "slot branch mismatch"
    assert jnp.allclose(out_intent, ref_intent, atol=2e-3, rtol=1e-2), "intent branch mismatch"

    print("KERNEL_OK")
</pallas_src>

<mosaic_0001>
module attributes {stable_mosaic.version = 11 : i64} {
  func.func @_dense_kernel(%arg0: i32, %arg1: i32, %arg2: memref<1x16x32xf32, #tpu.memory_space<vmem>>, %arg3: memref<1x32x144xf32, #tpu.memory_space<vmem>>, %arg4: memref<1x1x144xf32, #tpu.memory_space<vmem>>, %arg5: memref<1x16x24xf32, #tpu.memory_space<vmem>>, %arg6: memref<1x16x24xf32, #tpu.memory_space<vmem>>, %arg7: memref<1x16x24xf32, #tpu.memory_space<vmem>>, %arg8: memref<1x16x24xf32, #tpu.memory_space<vmem>>, %arg9: memref<1x16x48xf32, #tpu.memory_space<vmem>>) attributes {dimension_semantics = [#tpu.dimension_semantics<parallel>, #tpu.dimension_semantics<parallel>], iteration_bounds = array<i64: 2, 1>, scalar_prefetch = 0 : i64, scratch_operands = 0 : i64, tpu.core_type = #tpu.core_type<tc>, window_params = [{transform_indices = @transform_0, window_bounds = array<i64: 1, 16, 32>}, {transform_indices = @transform_1, window_bounds = array<i64: 1, 32, 144>}, {transform_indices = @transform_2, window_bounds = array<i64: 1, 1, 144>}, {transform_indices = @transform_3, window_bounds = array<i64: 1, 16, 24>}, {transform_indices = @transform_4, window_bounds = array<i64: 1, 16, 24>}, {transform_indices = @transform_5, window_bounds = array<i64: 1, 16, 24>}, {transform_indices = @transform_6, window_bounds = array<i64: 1, 16, 24>}, {transform_indices = @transform_7, window_bounds = array<i64: 1, 16, 48>}]} {
    %c0 = arith.constant 0 : index
    %c0_0 = arith.constant 0 : index
    %c0_1 = arith.constant 0 : index
    %0 = vector.load %arg2[%c0, %c0_0, %c0_1] : memref<1x16x32xf32, #tpu.memory_space<vmem>>, vector<1x16x32xf32>
    %1 = vector.shape_cast %0 : vector<1x16x32xf32> to vector<16x32xf32>
    %c0_2 = arith.constant 0 : index
    %c0_3 = arith.constant 0 : index
    %c0_4 = arith.constant 0 : index
    %2 = vector.load %arg3[%c0_2, %c0_3, %c0_4] : memref<1x32x144xf32, #tpu.memory_space<vmem>>, vector<1x32x144xf32>
    %3 = vector.shape_cast %2 : vector<1x32x144xf32> to vector<32x144xf32>
    %cst = arith.constant dense<0.000000e+00> : vector<16x144xf32>
    %4 = tpu.matmul %1, %3, %cst {dimension_numbers = #tpu.dot_dimension_numbers<[1], [0], [0], [1], [0, 0, 1, 1], [], []>} : vector<16x32xf32>, vector<32x144xf32>, vector<16x144xf32> -> vector<16x144xf32>
    %c0_5 = arith.constant 0 : index
    %c0_6 = arith.constant 0 : index
    %c0_7 = arith.constant 0 : index
    %5 = vector.load %arg4[%c0_5, %c0_6, %c0_7] : memref<1x1x144xf32, #tpu.memory_space<vmem>>, vector<1x1x144xf32>
    %6 = vector.shape_cast %5 : vector<1x1x144xf32> to vector<1x144xf32>
    %7 = vector.broadcast %6 : vector<1x144xf32> to vector<16x144xf32>
    %8 = arith.addf %4, %7 : vector<16x144xf32>
    %9 = vector.extract_strided_slice %8 {offsets = [0, 0], sizes = [16, 24], strides = [1, 1]} : vector<16x144xf32> to vector<16x24xf32>
    %c0_8 = arith.constant 0 : index
    %c0_9 = arith.constant 0 : index
    %c0_10 = arith.constant 0 : index
    %10 = vector.load %arg5[%c0_8, %c0_9, %c0_10] : memref<1x16x24xf32, #tpu.memory_space<vmem>>, vector<1x16x24xf32>
    %11 = vector.shape_cast %10 : vector<1x16x24xf32> to vector<16x24xf32>
    %12 = vector.shape_cast %9 : vector<16x24xf32> to vector<1x16x24xf32>
    tpu.vector_store %arg5[%c0_8, %c0_9, %c0_10], %12 {strides = array<i32>} : memref<1x16x24xf32, #tpu.memory_space<vmem>>, vector<1x16x24xf32>,
    %13 = vector.extract_strided_slice %8 {offsets = [0, 24], sizes = [16, 24], strides = [1, 1]} : vector<16x144xf32> to vector<16x24xf32>
    %c0_11 = arith.constant 0 : index
    %c0_12 = arith.constant 0 : index
    %c0_13 = arith.constant 0 : index
    %14 = vector.load %arg6[%c0_11, %c0_12, %c0_13] : memref<1x16x24xf32, #tpu.memory_space<vmem>>, vector<1x16x24xf32>
    %15 = vector.shape_cast %14 : vector<1x16x24xf32> to vector<16x24xf32>
    %16 = vector.shape_cast %13 : vector<16x24xf32> to vector<1x16x24xf32>
    tpu.vector_store %arg6[%c0_11, %c0_12, %c0_13], %16 {strides = array<i32>} : memref<1x16x24xf32, #tpu.memory_space<vmem>>, vector<1x16x24xf32>,
    %17 = vector.extract_strided_slice %8 {offsets = [0, 48], sizes = [16, 24], strides = [1, 1]} : vector<16x144xf32> to vector<16x24xf32>
    %c0_14 = arith.constant 0 : index
    %c0_15 = arith.constant 0 : index
    %c0_16 = arith.constant 0 : index
    %18 = vector.load %arg7[%c0_14, %c0_15, %c0_16] : memref<1x16x24xf32, #tpu.memory_space<vmem>>, vector<1x16x24xf32>
    %19 = vector.shape_cast %18 : vector<1x16x24xf32> to vector<16x24xf32>
    %20 = vector.shape_cast %17 : vector<16x24xf32> to vector<1x16x24xf32>
    tpu.vector_store %arg7[%c0_14, %c0_15, %c0_16], %20 {strides = array<i32>} : memref<1x16x24xf32, #tpu.memory_space<vmem>>, vector<1x16x24xf32>,
    %21 = vector.extract_strided_slice %8 {offsets = [0, 72], sizes = [16, 24], strides = [1, 1]} : vector<16x144xf32> to vector<16x24xf32>
    %c0_17 = arith.constant 0 : index
    %c0_18 = arith.constant 0 : index
    %c0_19 = arith.constant 0 : index
    %22 = vector.load %arg8[%c0_17, %c0_18, %c0_19] : memref<1x16x24xf32, #tpu.memory_space<vmem>>, vector<1x16x24xf32>
    %23 = vector.shape_cast %22 : vector<1x16x24xf32> to vector<16x24xf32>
    %24 = vector.shape_cast %21 : vector<16x24xf32> to vector<1x16x24xf32>
    tpu.vector_store %arg8[%c0_17, %c0_18, %c0_19], %24 {strides = array<i32>} : memref<1x16x24xf32, #tpu.memory_space<vmem>>, vector<1x16x24xf32>,
    %25 = vector.extract_strided_slice %8 {offsets = [0, 96], sizes = [16, 48], strides = [1, 1]} : vector<16x144xf32> to vector<16x48xf32>
    %c0_20 = arith.constant 0 : index
    %c0_21 = arith.constant 0 : index
    %c0_22 = arith.constant 0 : index
    %26 = vector.load %arg9[%c0_20, %c0_21, %c0_22] : memref<1x16x48xf32, #tpu.memory_space<vmem>>, vector<1x16x48xf32>
    %27 = vector.shape_cast %26 : vector<1x16x48xf32> to vector<16x48xf32>
    %28 = vector.shape_cast %25 : vector<16x48xf32> to vector<1x16x48xf32>
    tpu.vector_store %arg9[%c0_20, %c0_21, %c0_22], %28 {strides = array<i32>} : memref<1x16x48xf32, #tpu.memory_space<vmem>>, vector<1x16x48xf32>,
    return
  }
  func.func @transform_0(%arg0: i32, %arg1: i32) -> (i32, i32, i32) {
    %c0_i32 = arith.constant 0 : i32
    %c0_i32_0 = arith.constant 0 : i32
    return %arg0, %arg1, %c0_i32 : i32, i32, i32
  }
  func.func @transform_1(%arg0: i32, %arg1: i32) -> (i32, i32, i32) {
    %c0_i32 = arith.constant 0 : i32
    %c0_i32_0 = arith.constant 0 : i32
    %c0_i32_1 = arith.constant 0 : i32
    return %arg0, %c0_i32, %c0_i32_0 : i32, i32, i32
  }
  func.func @transform_2(%arg0: i32, %arg1: i32) -> (i32, i32, i32) {
    %c0_i32 = arith.constant 0 : i32
    %c0_i32_0 = arith.constant 0 : i32
    %c0_i32_1 = arith.constant 0 : i32
    return %arg0, %c0_i32, %c0_i32_0 : i32, i32, i32
  }
  func.func @transform_3(%arg0: i32, %arg1: i32) -> (i32, i32, i32) {
    %c0_i32 = arith.constant 0 : i32
    %c0_i32_0 = arith.constant 0 : i32
    return %arg0, %arg1, %c0_i32 : i32, i32, i32
  }
  func.func @transform_4(%arg0: i32, %arg1: i32) -> (i32, i32, i32) {
    %c0_i32 = arith.constant 0 : i32
    %c0_i32_0 = arith.constant 0 : i32
    return %arg0, %arg1, %c0_i32 : i32, i32, i32
  }
  func.func @transform_5(%arg0: i32, %arg1: i32) -> (i32, i32, i32) {
    %c0_i32 = arith.constant 0 : i32
    %c0_i32_0 = arith.constant 0 : i32
    return %arg0, %arg1, %c0_i32 : i32, i32, i32
  }
  func.func @transform_6(%arg0: i32, %arg1: i32) -> (i32, i32, i32) {
    %c0_i32 = arith.constant 0 : i32
    %c0_i32_0 = arith.constant 0 : i32
    return %arg0, %arg1, %c0_i32 : i32, i32, i32
  }
  func.func @transform_7(%arg0: i32, %arg1: i32) -> (i32, i32, i32) {
    %c0_i32 = arith.constant 0 : i32
    %c0_i32_0 = arith.constant 0 : i32
    return %arg0, %arg1, %c0_i32 : i32, i32, i32
  }
}

module attributes {stable_mosaic.version = 11 : i64} {
  func.func @_rope_attn_kernel(%arg0: i32, %arg1: i32, %arg2: memref<1x8x24xf32, #tpu.memory_space<vmem>>, %arg3: memref<1x8x24xf32, #tpu.memory_space<vmem>>, %arg4: memref<1x8x24xf32, #tpu.memory_space<vmem>>, %arg5: memref<1x8x24xf32, #tpu.memory_space<vmem>>, %arg6: memref<1x8x48xf32, #tpu.memory_space<vmem>>, %arg7: memref<8x24xf32, #tpu.memory_space<vmem>>, %arg8: memref<8x24xf32, #tpu.memory_space<vmem>>, %arg9: memref<1x1x8xf32, #tpu.memory_space<vmem>>, %arg10: memref<1x1x8x48xf32, #tpu.memory_space<vmem>>) attributes {dimension_semantics = [#tpu.dimension_semantics<parallel>, #tpu.dimension_semantics<parallel>], iteration_bounds = array<i64: 2, 2>, scalar_prefetch = 0 : i64, scratch_operands = 0 : i64, tpu.core_type = #tpu.core_type<tc>, window_params = [{transform_indices = @transform_0, window_bounds = array<i64: 1, 8, 24>}, {transform_indices = @transform_1, window_bounds = array<i64: 1, 8, 24>}, {transform_indices = @transform_2, window_bounds = array<i64: 1, 8, 24>}, {transform_indices = @transform_3, window_bounds = array<i64: 1, 8, 24>}, {transform_indices = @transform_4, window_bounds = array<i64: 1, 8, 48>}, {pipeline_mode = #tpu.pipeline_mode<synchronous>, transform_indices = @transform_5, window_bounds = array<i64: 8, 24>}, {pipeline_mode = #tpu.pipeline_mode<synchronous>, transform_indices = @transform_6, window_bounds = array<i64: 8, 24>}, {transform_indices = @transform_7, window_bounds = array<i64: 1, 1, 8>}, {transform_indices = @transform_8, window_bounds = array<i64: 1, 1, 8, 48>}]} {
    %c0 = arith.constant 0 : index
    %c0_0 = arith.constant 0 : index
    %0 = vector.load %arg7[%c0, %c0_0] : memref<8x24xf32, #tpu.memory_space<vmem>>, vector<8x24xf32>
    %c0_1 = arith.constant 0 : index
    %c0_2 = arith.constant 0 : index
    %1 = vector.load %arg8[%c0_1, %c0_2] : memref<8x24xf32, #tpu.memory_space<vmem>>, vector<8x24xf32>
    %c0_3 = arith.constant 0 : index
    %c0_4 = arith.constant 0 : index
    %c0_5 = arith.constant 0 : index
    %2 = vector.load %arg2[%c0_3, %c0_4, %c0_5] : memref<1x8x24xf32, #tpu.memory_space<vmem>>, vector<1x8x24xf32>
    %3 = vector.shape_cast %2 : vector<1x8x24xf32> to vector<8x24xf32>
    %c0_6 = arith.constant 0 : index
    %c0_7 = arith.constant 0 : index
    %c0_8 = arith.constant 0 : index
    %4 = vector.load %arg3[%c0_6, %c0_7, %c0_8] : memref<1x8x24xf32, #tpu.memory_space<vmem>>, vector<1x8x24xf32>
    %5 = vector.shape_cast %4 : vector<1x8x24xf32> to vector<8x24xf32>
    %c0_9 = arith.constant 0 : index
    %c0_10 = arith.constant 0 : index
    %c0_11 = arith.constant 0 : index
    %6 = vector.load %arg4[%c0_9, %c0_10, %c0_11] : memref<1x8x24xf32, #tpu.memory_space<vmem>>, vector<1x8x24xf32>
    %7 = vector.shape_cast %6 : vector<1x8x24xf32> to vector<8x24xf32>
    %c0_12 = arith.constant 0 : index
    %c0_13 = arith.constant 0 : index
    %c0_14 = arith.constant 0 : index
    %8 = vector.load %arg5[%c0_12, %c0_13, %c0_14] : memref<1x8x24xf32, #tpu.memory_space<vmem>>, vector<1x8x24xf32>
    %9 = vector.shape_cast %8 : vector<1x8x24xf32> to vector<8x24xf32>
    %c0_15 = arith.constant 0 : index
    %c0_16 = arith.constant 0 : index
    %c0_17 = arith.constant 0 : index
    %10 = vector.load %arg6[%c0_15, %c0_16, %c0_17] : memref<1x8x48xf32, #tpu.memory_space<vmem>>, vector<1x8x48xf32>
    %11 = vector.shape_cast %10 : vector<1x8x48xf32> to vector<8x48xf32>
    %c0_18 = arith.constant 0 : index
    %c0_19 = arith.constant 0 : index
    %c0_20 = arith.constant 0 : index
    %12 = vector.load %arg9[%c0_18, %c0_19, %c0_20] : memref<1x1x8xf32, #tpu.memory_space<vmem>>, vector<1x1x8xf32>
    %13 = vector.shape_cast %12 : vector<1x1x8xf32> to vector<1x8xf32>
    %14 = arith.mulf %3, %1 : vector<8x24xf32>
    %15 = arith.mulf %5, %0 : vector<8x24xf32>
    %16 = arith.subf %14, %15 : vector<8x24xf32>
    %17 = arith.mulf %5, %1 : vector<8x24xf32>
    %18 = arith.mulf %3, %0 : vector<8x24xf32>
    %19 = arith.addf %17, %18 : vector<8x24xf32>
    %20 = arith.mulf %7, %1 : vector<8x24xf32>
    %21 = arith.mulf %9, %0 : vector<8x24xf32>
    %22 = arith.subf %20, %21 : vector<8x24xf32>
    %23 = arith.mulf %9, %1 : vector<8x24xf32>
    %24 = arith.mulf %7, %0 : vector<8x24xf32>
    %25 = arith.addf %23, %24 : vector<8x24xf32>
    %26 = vector.extract_strided_slice %16 {offsets = [0, 0], sizes = [8, 2], strides = [1, 1]} : vector<8x24xf32> to vector<8x2xf32>
    %27 = vector.extract_strided_slice %22 {offsets = [0, 0], sizes = [8, 2], strides = [1, 1]} : vector<8x24xf32> to vector<8x2xf32>
    %cst = arith.constant dense<0.000000e+00> : vector<8x8xf32>
    %28 = tpu.matmul %26, %27, %cst {dimension_numbers = #tpu.dot_dimension_numbers<[1], [1], [0], [0], [0, 0, 1, 0], [], []>} : vector<8x2xf32>, vector<8x2xf32>, vector<8x8xf32> -> vector<8x8xf32>
    %29 = vector.extract_strided_slice %19 {offsets = [0, 0], sizes = [8, 2], strides = [1, 1]} : vector<8x24xf32> to vector<8x2xf32>
    %30 = vector.extract_strided_slice %25 {offsets = [0, 0], sizes = [8, 2], strides = [1, 1]} : vector<8x24xf32> to vector<8x2xf32>
    %cst_21 = arith.constant dense<0.000000e+00> : vector<8x8xf32>
    %31 = tpu.matmul %29, %30, %cst_21 {dimension_numbers = #tpu.dot_dimension_numbers<[1], [1], [0], [0], [0, 0, 1, 0], [], []>} : vector<8x2xf32>, vector<8x2xf32>, vector<8x8xf32> -> vector<8x8xf32>
    %32 = arith.addf %28, %31 : vector<8x8xf32>
    %cst_22 = arith.constant 5.000000e-01 : f32
    %33 = vector.broadcast %cst_22 : f32 to vector<8x8xf32>
    %34 = arith.mulf %32, %33 : vector<8x8xf32>
    %35 = vector.broadcast %13 : vector<1x8xf32> to vector<8x8xf32>
    %36 = arith.addf %34, %35 : vector<8x8xf32>
    %cst_23 = arith.constant dense<0xFF800000> : vector<8xf32>
    %37 = vector.multi_reduction <maximumf>, %36, %cst_23 [1] : vector<8x8xf32> to vector<8xf32>
    %38 = vector.shape_cast %37 : vector<8xf32> to vector<8x1xf32>
    %39 = vector.broadcast %38 : vector<8x1xf32> to vector<8x8xf32>
    %40 = arith.subf %36, %39 : vector<8x8xf32>
    %41 = math.exp %40 : vector<8x8xf32>
    %cst_24 = arith.constant dense<0.000000e+00> : vector<8xf32>
    %42 = vector.multi_reduction <add>, %41, %cst_24 [1] : vector<8x8xf32> to vector<8xf32>
    %43 = vector.shape_cast %42 : vector<8xf32> to vector<8x1xf32>
    %44 = tpu.reciprocal %43 {approx = true} : vector<8x1xf32> -> vector<8x1xf32>
    %45 = vector.broadcast %44 : vector<8x1xf32> to vector<8x8xf32>
    %46 = arith.mulf %41, %45 : vector<8x8xf32>
    %47 = vector.extract_strided_slice %11 {offsets = [0, 0], sizes = [8, 4], strides = [1, 1]} : vector<8x48xf32> to vector<8x4xf32>
    %cst_25 = arith.constant dense<0.000000e+00> : vector<8x4xf32>
    %48 = tpu.matmul %46, %47, %cst_25 {dimension_numbers = #tpu.dot_dimension_numbers<[1], [0], [0], [1], [0, 0, 1, 1], [], []>} : vector<8x8xf32>, vector<8x4xf32>, vector<8x4xf32> -> vector<8x4xf32>
    %49 = vector.extract_strided_slice %16 {offsets = [0, 2], sizes = [8, 2], strides = [1, 1]} : vector<8x24xf32> to vector<8x2xf32>
    %50 = vector.extract_strided_slice %22 {offsets = [0, 2], sizes = [8, 2], strides = [1, 1]} : vector<8x24xf32> to vector<8x2xf32>
    %cst_26 = arith.constant dense<0.000000e+00> : vector<8x8xf32>
    %51 = tpu.matmul %49, %50, %cst_26 {dimension_numbers = #tpu.dot_dimension_numbers<[1], [1], [0], [0], [0, 0, 1, 0], [], []>} : vector<8x2xf32>, vector<8x2xf32>, vector<8x8xf32> -> vector<8x8xf32>
    %52 = vector.extract_strided_slice %19 {offsets = [0, 2], sizes = [8, 2], strides = [1, 1]} : vector<8x24xf32> to vector<8x2xf32>
    %53 = vector.extract_strided_slice %25 {offsets = [0, 2], sizes = [8, 2], strides = [1, 1]} : vector<8x24xf32> to vector<8x2xf32>
    %cst_27 = arith.constant dense<0.000000e+00> : vector<8x8xf32>
    %54 = tpu.matmul %52, %53, %cst_27 {dimension_numbers = #tpu.dot_dimension_numbers<[1], [1], [0], [0], [0, 0, 1, 0], [], []>} : vector<8x2xf32>, vector<8x2xf32>, vector<8x8xf32> -> vector<8x8xf32>
    %55 = arith.addf %51, %54 : vector<8x8xf32>
    %cst_28 = arith.constant 5.000000e-01 : f32
    %56 = vector.broadcast %cst_28 : f32 to vector<8x8xf32>
    %57 = arith.mulf %55, %56 : vector<8x8xf32>
    %58 = vector.broadcast %13 : vector<1x8xf32> to vector<8x8xf32>
    %59 = arith.addf %57, %58 : vector<8x8xf32>
    %cst_29 = arith.constant dense<0xFF800000> : vector<8xf32>
    %60 = vector.multi_reduction <maximumf>, %59, %cst_29 [1] : vector<8x8xf32> to vector<8xf32>
    %61 = vector.shape_cast %60 : vector<8xf32> to vector<8x1xf32>
    %62 = vector.broadcast %61 : vector<8x1xf32> to vector<8x8xf32>
    %63 = arith.subf %59, %62 : vector<8x8xf32>
    %64 = math.exp %63 : vector<8x8xf32>
    %cst_30 = arith.constant dense<0.000000e+00> : vector<8xf32>
    %65 = vector.multi_reduction <add>, %64, %cst_30 [1] : vector<8x8xf32> to vector<8xf32>
    %66 = vector.shape_cast %65 : vector<8xf32> to vector<8x1xf32>
    %67 = tpu.reciprocal %66 {approx = true} : vector<8x1xf32> -> vector<8x1xf32>
    %68 = vector.broadcast %67 : vector<8x1xf32> to vector<8x8xf32>
    %69 = arith.mulf %64, %68 : vector<8x8xf32>
    %70 = vector.extract_strided_slice %11 {offsets = [0, 4], sizes = [8, 4], strides = [1, 1]} : vector<8x48xf32> to vector<8x4xf32>
    %cst_31 = arith.constant dense<0.000000e+00> : vector<8x4xf32>
    %71 = tpu.matmul %69, %70, %cst_31 {dimension_numbers = #tpu.dot_dimension_numbers<[1], [0], [0], [1], [0, 0, 1, 1], [], []>} : vector<8x8xf32>, vector<8x4xf32>, vector<8x4xf32> -> vector<8x4xf32>
    %72 = vector.extract_strided_slice %16 {offsets = [0, 4], sizes = [8, 2], strides = [1, 1]} : vector<8x24xf32> to vector<8x2xf32>
    %73 = vector.extract_strided_slice %22 {offsets = [0, 4], sizes = [8, 2], strides = [1, 1]} : vector<8x24xf32> to vector<8x2xf32>
    %cst_32 = arith.constant dense<0.000000e+00> : vector<8x8xf32>
    %74 = tpu.matmul %72, %73, %cst_32 {dimension_numbers = #tpu.dot_dimension_numbers<[1], [1], [0], [0], [0, 0, 1, 0], [], []>} : vector<8x2xf32>, vector<8x2xf32>, vector<8x8xf32> -> vector<8x8xf32>
    %75 = vector.extract_strided_slice %19 {offsets = [0, 4], sizes = [8, 2], strides = [1, 1]} : vector<8x24xf32> to vector<8x2xf32>
    %76 = vector.extract_strided_slice %25 {offsets = [0, 4], sizes = [8, 2], strides = [1, 1]} : vector<8x24xf32> to vector<8x2xf32>
    %cst_33 = arith.constant dense<0.000000e+00> : vector<8x8xf32>
    %77 = tpu.matmul %75, %76, %cst_33 {dimension_numbers = #tpu.dot_dimension_numbers<[1], [1], [0], [0], [0, 0, 1, 0], [], []>} : vector<8x2xf32>, vector<8x2xf32>, vector<8x8xf32> -> vector<8x8xf32>
    %78 = arith.addf %74, %77 : vector<8x8xf32>
    %cst_34 = arith.constant 5.000000e-01 : f32
    %79 = vector.broadcast %cst_34 : f32 to vector<8x8xf32>
    %80 = arith.mulf %78, %79 : vector<8x8xf32>
    %81 = vector.broadcast %13 : vector<1x8xf32> to vector<8x8xf32>
    %82 = arith.addf %80, %81 : vector<8x8xf32>
    %cst_35 = arith.constant dense<0xFF800000> : vector<8xf32>
    %83 = vector.multi_reduction <maximumf>, %82, %cst_35 [1] : vector<8x8xf32> to vector<8xf32>
    %84 = vector.shape_cast %83 : vector<8xf32> to vector<8x1xf32>
    %85 = vector.broadcast %84 : vector<8x1xf32> to vector<8x8xf32>
    %86 = arith.subf %82, %85 : vector<8x8xf32>
    %87 = math.exp %86 : vector<8x8xf32>
    %cst_36 = arith.constant dense<0.000000e+00> : vector<8xf32>
    %88 = vector.multi_reduction <add>, %87, %cst_36 [1] : vector<8x8xf32> to vector<8xf32>
    %89 = vector.shape_cast %88 : vector<8xf32> to vector<8x1xf32>
    %90 = tpu.reciprocal %89 {approx = true} : vector<8x1xf32> -> vector<8x1xf32>
    %91 = vector.broadcast %90 : vector<8x1xf32> to vector<8x8xf32>
    %92 = arith.mulf %87, %91 : vector<8x8xf32>
    %93 = vector.extract_strided_slice %11 {offsets = [0, 8], sizes = [8, 4], strides = [1, 1]} : vector<8x48xf32> to vector<8x4xf32>
    %cst_37 = arith.constant dense<0.000000e+00> : vector<8x4xf32>
    %94 = tpu.matmul %92, %93, %cst_37 {dimension_numbers = #tpu.dot_dimension_numbers<[1], [0], [0], [1], [0, 0, 1, 1], [], []>} : vector<8x8xf32>, vector<8x4xf32>, vector<8x4xf32> -> vector<8x4xf32>
    %95 = vector.extract_strided_slice %16 {offsets = [0, 6], sizes = [8, 2], strides = [1, 1]} : vector<8x24xf32> to vector<8x2xf32>
    %96 = vector.extract_strided_slice %22 {offsets = [0, 6], sizes = [8, 2], strides = [1, 1]} : vector<8x24xf32> to vector<8x2xf32>
    %cst_38 = arith.constant dense<0.000000e+00> : vector<8x8xf32>
    %97 = tpu.matmul %95, %96, %cst_38 {dimension_numbers = #tpu.dot_dimension_numbers<[1], [1], [0], [0], [0, 0, 1, 0], [], []>} : vector<8x2xf32>, vector<8x2xf32>, vector<8x8xf32> -> vector<8x8xf32>
    %98 = vector.extract_strided_slice %19 {offsets = [0, 6], sizes = [8, 2], strides = [1, 1]} : vector<8x24xf32> to vector<8x2xf32>
    %99 = vector.extract_strided_slice %25 {offsets = [0, 6], sizes = [8, 2], strides = [1, 1]} : vector<8x24xf32> to vector<8x2xf32>
    %cst_39 = arith.constant dense<0.000000e+00> : vector<8x8xf32>
    %100 = tpu.matmul %98, %99, %cst_39 {dimension_numbers = #tpu.dot_dimension_numbers<[1], [1], [0], [0], [0, 0, 1, 0], [], []>} : vector<8x2xf32>, vector<8x2xf32>, vector<8x8xf32> -> vector<8x8xf32>
    %101 = arith.addf %97, %100 : vector<8x8xf32>
    %cst_40 = arith.constant 5.000000e-01 : f32
    %102 = vector.broadcast %cst_40 : f32 to vector<8x8xf32>
    %103 = arith.mulf %101, %102 : vector<8x8xf32>
    %104 = vector.broadcast %13 : vector<1x8xf32> to vector<8x8xf32>
    %105 = arith.addf %103, %104 : vector<8x8xf32>
    %cst_41 = arith.constant dense<0xFF800000> : vector<8xf32>
    %106 = vector.multi_reduction <maximumf>, %105, %cst_41 [1] : vector<8x8xf32> to vector<8xf32>
    %107 = vector.shape_cast %106 : vector<8xf32> to vector<8x1xf32>
    %108 = vector.broadcast %107 : vector<8x1xf32> to vector<8x8xf32>
    %109 = arith.subf %105, %108 : vector<8x8xf32>
    %110 = math.exp %109 : vector<8x8xf32>
    %cst_42 = arith.constant dense<0.000000e+00> : vector<8xf32>
    %111 = vector.multi_reduction <add>, %110, %cst_42 [1] : vector<8x8xf32> to vector<8xf32>
    %112 = vector.shape_cast %111 : vector<8xf32> to vector<8x1xf32>
    %113 = tpu.reciprocal %112 {approx = true} : vector<8x1xf32> -> vector<8x1xf32>
    %114 = vector.broadcast %113 : vector<8x1xf32> to vector<8x8xf32>
    %115 = arith.mulf %110, %114 : vector<8x8xf32>
    %116 = vector.extract_strided_slice %11 {offsets = [0, 12], sizes = [8, 4], strides = [1, 1]} : vector<8x48xf32> to vector<8x4xf32>
    %cst_43 = arith.constant dense<0.000000e+00> : vector<8x4xf32>
    %117 = tpu.matmul %115, %116, %cst_43 {dimension_numbers = #tpu.dot_dimension_numbers<[1], [0], [0], [1], [0, 0, 1, 1], [], []>} : vector<8x8xf32>, vector<8x4xf32>, vector<8x4xf32> -> vector<8x4xf32>
    %118 = vector.extract_strided_slice %16 {offsets = [0, 8], sizes = [8, 2], strides = [1, 1]} : vector<8x24xf32> to vector<8x2xf32>
    %119 = vector.extract_strided_slice %22 {offsets = [0, 8], sizes = [8, 2], strides = [1, 1]} : vector<8x24xf32> to vector<8x2xf32>
    %cst_44 = arith.constant dense<0.000000e+00> : vector<8x8xf32>
    %120 = tpu.matmul %118, %119, %cst_44 {dimension_numbers = #tpu.dot_dimension_numbers<[1], [1], [0], [0], [0, 0, 1, 0], [], []>} : vector<8x2xf32>, vector<8x2xf32>, vector<8x8xf32> -> vector<8x8xf32>
    %121 = vector.extract_strided_slice %19 {offsets = [0, 8], sizes = [8, 2], strides = [1, 1]} : vector<8x24xf32> to vector<8x2xf32>
    %122 = vector.extract_strided_slice %25 {offsets = [0, 8], sizes = [8, 2], strides = [1, 1]} : vector<8x24xf32> to vector<8x2xf32>
    %cst_45 = arith.constant dense<0.000000e+00> : vector<8x8xf32>
    %123 = tpu.matmul %121, %122, %cst_45 {dimension_numbers = #tpu.dot_dimension_numbers<[1], [1], [0], [0], [0, 0, 1, 0], [], []>} : vector<8x2xf32>, vector<8x2xf32>, vector<8x8xf32> -> vector<8x8xf32>
    %124 = arith.addf %120, %123 : vector<8x8xf32>
    %cst_46 = arith.constant 5.000000e-01 : f32
    %125 = vector.broadcast %cst_46 : f32 to vector<8x8xf32>
    %126 = arith.mulf %124, %125 : vector<8x8xf32>
    %127 = vector.broadcast %13 : vector<1x8xf32> to vector<8x8xf32>
    %128 = arith.addf %126, %127 : vector<8x8xf32>
    %cst_47 = arith.constant dense<0xFF800000> : vector<8xf32>
    %129 = vector.multi_reduction <maximumf>, %128, %cst_47 [1] : vector<8x8xf32> to vector<8xf32>
    %130 = vector.shape_cast %129 : vector<8xf32> to vector<8x1xf32>
    %131 = vector.broadcast %130 : vector<8x1xf32> to vector<8x8xf32>
    %132 = arith.subf %128, %131 : vector<8x8xf32>
    %133 = math.exp %132 : vector<8x8xf32>
    %cst_48 = arith.constant dense<0.000000e+00> : vector<8xf32>
    %134 = vector.multi_reduction <add>, %133, %cst_48 [1] : vector<8x8xf32> to vector<8xf32>
    %135 = vector.shape_cast %134 : vector<8xf32> to vector<8x1xf32>
    %136 = tpu.reciprocal %135 {approx = true} : vector<8x1xf32> -> vector<8x1xf32>
    %137 = vector.broadcast %136 : vector<8x1xf32> to vector<8x8xf32>
    %138 = arith.mulf %133, %137 : vector<8x8xf32>
    %139 = vector.extract_strided_slice %11 {offsets = [0, 16], sizes = [8, 4], strides = [1, 1]} : vector<8x48xf32> to vector<8x4xf32>
    %cst_49 = arith.constant dense<0.000000e+00> : vector<8x4xf32>
    %140 = tpu.matmul %138, %139, %cst_49 {dimension_numbers = #tpu.dot_dimension_numbers<[1], [0], [0], [1], [0, 0, 1, 1], [], []>} : vector<8x8xf32>, vector<8x4xf32>, vector<8x4xf32> -> vector<8x4xf32>
    %141 = vector.extract_strided_slice %16 {offsets = [0, 10], sizes = [8, 2], strides = [1, 1]} : vector<8x24xf32> to vector<8x2xf32>
    %142 = vector.extract_strided_slice %22 {offsets = [0, 10], sizes = [8, 2], strides = [1, 1]} : vector<8x24xf32> to vector<8x2xf32>
    %cst_50 = arith.constant dense<0.000000e+00> : vector<8x8xf32>
    %143 = tpu.matmul %141, %142, %cst_50 {dimension_numbers = #tpu.dot_dimension_numbers<[1], [1], [0], [0], [0, 0, 1, 0], [], []>} : vector<8x2xf32>, vector<8x2xf32>, vector<8x8xf32> -> vector<8x8xf32>
    %144 = vector.extract_strided_slice %19 {offsets = [0, 10], sizes = [8, 2], strides = [1, 1]} : vector<8x24xf32> to vector<8x2xf32>
    %145 = vector.extract_strided_slice %25 {offsets = [0, 10], sizes = [8, 2], strides = [1, 1]} : vector<8x24xf32> to vector<8x2xf32>
    %cst_51 = arith.constant dense<0.000000e+00> : vector<8x8xf32>
    %146 = tpu.matmul %144, %145, %cst_51 {dimension_numbers = #tpu.dot_dimension_numbers<[1], [1], [0], [0], [0, 0, 1, 0], [], []>} : vector<8x2xf32>, vector<8x2xf32>, vector<8x8xf32> -> vector<8x8xf32>
    %147 = arith.addf %143, %146 : vector<8x8xf32>
    %cst_52 = arith.constant 5.000000e-01 : f32
    %148 = vector.broadcast %cst_52 : f32 to vector<8x8xf32>
    %149 = arith.mulf %147, %148 : vector<8x8xf32>
    %150 = vector.broadcast %13 : vector<1x8xf32> to vector<8x8xf32>
    %151 = arith.addf %149, %150 : vector<8x8xf32>
    %cst_53 = arith.constant dense<0xFF800000> : vector<8xf32>
    %152 = vector.multi_reduction <maximumf>, %151, %cst_53 [1] : vector<8x8xf32> to vector<8xf32>
    %153 = vector.shape_cast %152 : vector<8xf32> to vector<8x1xf32>
    %154 = vector.broadcast %153 : vector<8x1xf32> to vector<8x8xf32>
    %155 = arith.subf %151, %154 : vector<8x8xf32>
    %156 = math.exp %155 : vector<8x8xf32>
    %cst_54 = arith.constant dense<0.000000e+00> : vector<8xf32>
    %157 = vector.multi_reduction <add>, %156, %cst_54 [1] : vector<8x8xf32> to vector<8xf32>
    %158 = vector.shape_cast %157 : vector<8xf32> to vector<8x1xf32>
    %159 = tpu.reciprocal %158 {approx = true} : vector<8x1xf32> -> vector<8x1xf32>
    %160 = vector.broadcast %159 : vector<8x1xf32> to vector<8x8xf32>
    %161 = arith.mulf %156, %160 : vector<8x8xf32>
    %162 = vector.extract_strided_slice %11 {offsets = [0, 20], sizes = [8, 4], strides = [1, 1]} : vector<8x48xf32> to vector<8x4xf32>
    %cst_55 = arith.constant dense<0.000000e+00> : vector<8x4xf32>
    %163 = tpu.matmul %161, %162, %cst_55 {dimension_numbers = #tpu.dot_dimension_numbers<[1], [0], [0], [1], [0, 0, 1, 1], [], []>} : vector<8x8xf32>, vector<8x4xf32>, vector<8x4xf32> -> vector<8x4xf32>
    %164 = vector.extract_strided_slice %16 {offsets = [0, 12], sizes = [8, 2], strides = [1, 1]} : vector<8x24xf32> to vector<8x2xf32>
    %165 = vector.extract_strided_slice %22 {offsets = [0, 12], sizes = [8, 2], strides = [1, 1]} : vector<8x24xf32> to vector<8x2xf32>
    %cst_56 = arith.constant dense<0.000000e+00> : vector<8x8xf32>
    %166 = tpu.matmul %164, %165, %cst_56 {dimension_numbers = #tpu.dot_dimension_numbers<[1], [1], [0], [0], [0, 0, 1, 0], [], []>} : vector<8x2xf32>, vector<8x2xf32>, vector<8x8xf32> -> vector<8x8xf32>
    %167 = vector.extract_strided_slice %19 {offsets = [0, 12], sizes = [8, 2], strides = [1, 1]} : vector<8x24xf32> to vector<8x2xf32>
    %168 = vector.extract_strided_slice %25 {offsets = [0, 12], sizes = [8, 2], strides = [1, 1]} : vector<8x24xf32> to vector<8x2xf32>
    %cst_57 = arith.constant dense<0.000000e+00> : vector<8x8xf32>
    %169 = tpu.matmul %167, %168, %cst_57 {dimension_numbers = #tpu.dot_dimension_numbers<[1], [1], [0], [0], [0, 0, 1, 0], [], []>} : vector<8x2xf32>, vector<8x2xf32>, vector<8x8xf32> -> vector<8x8xf32>
    %170 = arith.addf %166, %169 : vector<8x8xf32>
    %cst_58 = arith.constant 5.000000e-01 : f32
    %171 = vector.broadcast %cst_58 : f32 to vector<8x8xf32>
    %172 = arith.mulf %170, %171 : vector<8x8xf32>
    %173 = vector.broadcast %13 : vector<1x8xf32> to vector<8x8xf32>
    %174 = arith.addf %172, %173 : vector<8x8xf32>
    %cst_59 = arith.constant dense<0xFF800000> : vector<8xf32>
    %175 = vector.multi_reduction <maximumf>, %174, %cst_59 [1] : vector<8x8xf32> to vector<8xf32>
    %176 = vector.shape_cast %175 : vector<8xf32> to vector<8x1xf32>
    %177 = vector.broadcast %176 : vector<8x1xf32> to vector<8x8xf32>
    %178 = arith.subf %174, %177 : vector<8x8xf32>
    %179 = math.exp %178 : vector<8x8xf32>
    %cst_60 = arith.constant dense<0.000000e+00> : vector<8xf32>
    %180 = vector.multi_reduction <add>, %179, %cst_60 [1] : vector<8x8xf32> to vector<8xf32>
    %181 = vector.shape_cast %180 : vector<8xf32> to vector<8x1xf32>
    %182 = tpu.reciprocal %181 {approx = true} : vector<8x1xf32> -> vector<8x1xf32>
    %183 = vector.broadcast %182 : vector<8x1xf32> to vector<8x8xf32>
    %184 = arith.mulf %179, %183 : vector<8x8xf32>
    %185 = vector.extract_strided_slice %11 {offsets = [0, 24], sizes = [8, 4], strides = [1, 1]} : vector<8x48xf32> to vector<8x4xf32>
    %cst_61 = arith.constant dense<0.000000e+00> : vector<8x4xf32>
    %186 = tpu.matmul %184, %185, %cst_61 {dimension_numbers = #tpu.dot_dimension_numbers<[1], [0], [0], [1], [0, 0, 1, 1], [], []>} : vector<8x8xf32>, vector<8x4xf32>, vector<8x4xf32> -> vector<8x4xf32>
    %187 = vector.extract_strided_slice %16 {offsets = [0, 14], sizes = [8, 2], strides = [1, 1]} : vector<8x24xf32> to vector<8x2xf32>
    %188 = vector.extract_strided_slice %22 {offsets = [0, 14], sizes = [8, 2], strides = [1, 1]} : vector<8x24xf32> to vector<8x2xf32>
    %cst_62 = arith.constant dense<0.000000e+00> : vector<8x8xf32>
    %189 = tpu.matmul %187, %188, %cst_62 {dimension_numbers = #tpu.dot_dimension_numbers<[1], [1], [0], [0], [0, 0, 1, 0], [], []>} : vector<8x2xf32>, vector<8x2xf32>, vector<8x8xf32> -> vector<8x8xf32>
    %190 = vector.extract_strided_slice %19 {offsets = [0, 14], sizes = [8, 2], strides = [1, 1]} : vector<8x24xf32> to vector<8x2xf32>
    %191 = vector.extract_strided_slice %25 {offsets = [0, 14], sizes = [8, 2], strides = [1, 1]} : vector<8x24xf32> to vector<8x2xf32>
    %cst_63 = arith.constant dense<0.000000e+00> : vector<8x8xf32>
    %192 = tpu.matmul %190, %191, %cst_63 {dimension_numbers = #tpu.dot_dimension_numbers<[1], [1], [0], [0], [0, 0, 1, 0], [], []>} : vector<8x2xf32>, vector<8x2xf32>, vector<8x8xf32> -> vector<8x8xf32>
    %193 = arith.addf %189, %192 : vector<8x8xf32>
    %cst_64 = arith.constant 5.000000e-01 : f32
    %194 = vector.broadcast %cst_64 : f32 to vector<8x8xf32>
    %195 = arith.mulf %193, %194 : vector<8x8xf32>
    %196 = vector.broadcast %13 : vector<1x8xf32> to vector<8x8xf32>
    %197 = arith.addf %195, %196 : vector<8x8xf32>
    %cst_65 = arith.constant dense<0xFF800000> : vector<8xf32>
    %198 = vector.multi_reduction <maximumf>, %197, %cst_65 [1] : vector<8x8xf32> to vector<8xf32>
    %199 = vector.shape_cast %198 : vector<8xf32> to vector<8x1xf32>
    %200 = vector.broadcast %199 : vector<8x1xf32> to vector<8x8xf32>
    %201 = arith.subf %197, %200 : vector<8x8xf32>
    %202 = math.exp %201 : vector<8x8xf32>
    %cst_66 = arith.constant dense<0.000000e+00> : vector<8xf32>
    %203 = vector.multi_reduction <add>, %202, %cst_66 [1] : vector<8x8xf32> to vector<8xf32>
    %204 = vector.shape_cast %203 : vector<8xf32> to vector<8x1xf32>
    %205 = tpu.reciprocal %204 {approx = true} : vector<8x1xf32> -> vector<8x1xf32>
    %206 = vector.broadcast %205 : vector<8x1xf32> to vector<8x8xf32>
    %207 = arith.mulf %202, %206 : vector<8x8xf32>
    %208 = vector.extract_strided_slice %11 {offsets = [0, 28], sizes = [8, 4], strides = [1, 1]} : vector<8x48xf32> to vector<8x4xf32>
    %cst_67 = arith.constant dense<0.000000e+00> : vector<8x4xf32>
    %209 = tpu.matmul %207, %208, %cst_67 {dimension_numbers = #tpu.dot_dimension_numbers<[1], [0], [0], [1], [0, 0, 1, 1], [], []>} : vector<8x8xf32>, vector<8x4xf32>, vector<8x4xf32> -> vector<8x4xf32>
    %210 = vector.extract_strided_slice %16 {offsets = [0, 16], sizes = [8, 2], strides = [1, 1]} : vector<8x24xf32> to vector<8x2xf32>
    %211 = vector.extract_strided_slice %22 {offsets = [0, 16], sizes = [8, 2], strides = [1, 1]} : vector<8x24xf32> to vector<8x2xf32>
    %cst_68 = arith.constant dense<0.000000e+00> : vector<8x8xf32>
    %212 = tpu.matmul %210, %211, %cst_68 {dimension_numbers = #tpu.dot_dimension_numbers<[1], [1], [0], [0], [0, 0, 1, 0], [], []>} : vector<8x2xf32>, vector<8x2xf32>, vector<8x8xf32> -> vector<8x8xf32>
    %213 = vector.extract_strided_slice %19 {offsets = [0, 16], sizes = [8, 2], strides = [1, 1]} : vector<8x24xf32> to vector<8x2xf32>
    %214 = vector.extract_strided_slice %25 {offsets = [0, 16], sizes = [8, 2], strides = [1, 1]} : vector<8x24xf32> to vector<8x2xf32>
    %cst_69 = arith.constant dense<0.000000e+00> : vector<8x8xf32>
    %215 = tpu.matmul %213, %214, %cst_69 {dimension_numbers = #tpu.dot_dimension_numbers<[1], [1], [0], [0], [0, 0, 1, 0], [], []>} : vector<8x2xf32>, vector<8x2xf32>, vector<8x8xf32> -> vector<8x8xf32>
    %216 = arith.addf %212, %215 : vector<8x8xf32>
    %cst_70 = arith.constant 5.000000e-01 : f32
    %217 = vector.broadcast %cst_70 : f32 to vector<8x8xf32>
    %218 = arith.mulf %216, %217 : vector<8x8xf32>
    %219 = vector.broadcast %13 : vector<1x8xf32> to vector<8x8xf32>
    %220 = arith.addf %218, %219 : vector<8x8xf32>
    %cst_71 = arith.constant dense<0xFF800000> : vector<8xf32>
    %221 = vector.multi_reduction <maximumf>, %220, %cst_71 [1] : vector<8x8xf32> to vector<8xf32>
    %222 = vector.shape_cast %221 : vector<8xf32> to vector<8x1xf32>
    %223 = vector.broadcast %222 : vector<8x1xf32> to vector<8x8xf32>
    %224 = arith.subf %220, %223 : vector<8x8xf32>
    %225 = math.exp %224 : vector<8x8xf32>
    %cst_72 = arith.constant dense<0.000000e+00> : vector<8xf32>
    %226 = vector.multi_reduction <add>, %225, %cst_72 [1] : vector<8x8xf32> to vector<8xf32>
    %227 = vector.shape_cast %226 : vector<8xf32> to vector<8x1xf32>
    %228 = tpu.reciprocal %227 {approx = true} : vector<8x1xf32> -> vector<8x1xf32>
    %229 = vector.broadcast %228 : vector<8x1xf32> to vector<8x8xf32>
    %230 = arith.mulf %225, %229 : vector<8x8xf32>
    %231 = vector.extract_strided_slice %11 {offsets = [0, 32], sizes = [8, 4], strides = [1, 1]} : vector<8x48xf32> to vector<8x4xf32>
    %cst_73 = arith.constant dense<0.000000e+00> : vector<8x4xf32>
    %232 = tpu.matmul %230, %231, %cst_73 {dimension_numbers = #tpu.dot_dimension_numbers<[1], [0], [0], [1], [0, 0, 1, 1], [], []>} : vector<8x8xf32>, vector<8x4xf32>, vector<8x4xf32> -> vector<8x4xf32>
    %233 = vector.extract_strided_slice %16 {offsets = [0, 18], sizes = [8, 2], strides = [1, 1]} : vector<8x24xf32> to vector<8x2xf32>
    %234 = vector.extract_strided_slice %22 {offsets = [0, 18], sizes = [8, 2], strides = [1, 1]} : vector<8x24xf32> to vector<8x2xf32>
    %cst_74 = arith.constant dense<0.000000e+00> : vector<8x8xf32>
    %235 = tpu.matmul %233, %234, %cst_74 {dimension_numbers = #tpu.dot_dimension_numbers<[1], [1], [0], [0], [0, 0, 1, 0], [], []>} : vector<8x2xf32>, vector<8x2xf32>, vector<8x8xf32> -> vector<8x8xf32>
    %236 = vector.extract_strided_slice %19 {offsets = [0, 18], sizes = [8, 2], strides = [1, 1]} : vector<8x24xf32> to vector<8x2xf32>
    %237 = vector.extract_strided_slice %25 {offsets = [0, 18], sizes = [8, 2], strides = [1, 1]} : vector<8x24xf32> to vector<8x2xf32>
    %cst_75 = arith.constant dense<0.000000e+00> : vector<8x8xf32>
    %238 = tpu.matmul %236, %237, %cst_75 {dimension_numbers = #tpu.dot_dimension_numbers<[1], [1], [0], [0], [0, 0, 1, 0], [], []>} : vector<8x2xf32>, vector<8x2xf32>, vector<8x8xf32> -> vector<8x8xf32>
    %239 = arith.addf %235, %238 : vector<8x8xf32>
    %cst_76 = arith.constant 5.000000e-01 : f32
    %240 = vector.broadcast %cst_76 : f32 to vector<8x8xf32>
    %241 = arith.mulf %239, %240 : vector<8x8xf32>
    %242 = vector.broadcast %13 : vector<1x8xf32> to vector<8x8xf32>
    %243 = arith.addf %241, %242 : vector<8x8xf32>
    %cst_77 = arith.constant dense<0xFF800000> : vector<8xf32>
    %244 = vector.multi_reduction <maximumf>, %243, %cst_77 [1] : vector<8x8xf32> to vector<8xf32>
    %245 = vector.shape_cast %244 : vector<8xf32> to vector<8x1xf32>
    %246 = vector.broadcast %245 : vector<8x1xf32> to vector<8x8xf32>
    %247 = arith.subf %243, %246 : vector<8x8xf32>
    %248 = math.exp %247 : vector<8x8xf32>
    %cst_78 = arith.constant dense<0.000000e+00> : vector<8xf32>
    %249 = vector.multi_reduction <add>, %248, %cst_78 [1] : vector<8x8xf32> to vector<8xf32>
    %250 = vector.shape_cast %249 : vector<8xf32> to vector<8x1xf32>
    %251 = tpu.reciprocal %250 {approx = true} : vector<8x1xf32> -> vector<8x1xf32>
    %252 = vector.broadcast %251 : vector<8x1xf32> to vector<8x8xf32>
    %253 = arith.mulf %248, %252 : vector<8x8xf32>
    %254 = vector.extract_strided_slice %11 {offsets = [0, 36], sizes = [8, 4], strides = [1, 1]} : vector<8x48xf32> to vector<8x4xf32>
    %cst_79 = arith.constant dense<0.000000e+00> : vector<8x4xf32>
    %255 = tpu.matmul %253, %254, %cst_79 {dimension_numbers = #tpu.dot_dimension_numbers<[1], [0], [0], [1], [0, 0, 1, 1], [], []>} : vector<8x8xf32>, vector<8x4xf32>, vector<8x4xf32> -> vector<8x4xf32>
    %256 = vector.extract_strided_slice %16 {offsets = [0, 20], sizes = [8, 2], strides = [1, 1]} : vector<8x24xf32> to vector<8x2xf32>
    %257 = vector.extract_strided_slice %22 {offsets = [0, 20], sizes = [8, 2], strides = [1, 1]} : vector<8x24xf32> to vector<8x2xf32>
    %cst_80 = arith.constant dense<0.000000e+00> : vector<8x8xf32>
    %258 = tpu.matmul %256, %257, %cst_80 {dimension_numbers = #tpu.dot_dimension_numbers<[1], [1], [0], [0], [0, 0, 1, 0], [], []>} : vector<8x2xf32>, vector<8x2xf32>, vector<8x8xf32> -> vector<8x8xf32>
    %259 = vector.extract_strided_slice %19 {offsets = [0, 20], sizes = [8, 2], strides = [1, 1]} : vector<8x24xf32> to vector<8x2xf32>
    %260 = vector.extract_strided_slice %25 {offsets = [0, 20], sizes = [8, 2], strides = [1, 1]} : vector<8x24xf32> to vector<8x2xf32>
    %cst_81 = arith.constant dense<0.000000e+00> : vector<8x8xf32>
    %261 = tpu.matmul %259, %260, %cst_81 {dimension_numbers = #tpu.dot_dimension_numbers<[1], [1], [0], [0], [0, 0, 1, 0], [], []>} : vector<8x2xf32>, vector<8x2xf32>, vector<8x8xf32> -> vector<8x8xf32>
    %262 = arith.addf %258, %261 : vector<8x8xf32>
    %cst_82 = arith.constant 5.000000e-01 : f32
    %263 = vector.broadcast %cst_82 : f32 to vector<8x8xf32>
    %264 = arith.mulf %262, %263 : vector<8x8xf32>
    %265 = vector.broadcast %13 : vector<1x8xf32> to vector<8x8xf32>
    %266 = arith.addf %264, %265 : vector<8x8xf32>
    %cst_83 = arith.constant dense<0xFF800000> : vector<8xf32>
    %267 = vector.multi_reduction <maximumf>, %266, %cst_83 [1] : vector<8x8xf32> to vector<8xf32>
    %268 = vector.shape_cast %267 : vector<8xf32> to vector<8x1xf32>
    %269 = vector.broadcast %268 : vector<8x1xf32> to vector<8x8xf32>
    %270 = arith.subf %266, %269 : vector<8x8xf32>
    %271 = math.exp %270 : vector<8x8xf32>
    %cst_84 = arith.constant dense<0.000000e+00> : vector<8xf32>
    %272 = vector.multi_reduction <add>, %271, %cst_84 [1] : vector<8x8xf32> to vector<8xf32>
    %273 = vector.shape_cast %272 : vector<8xf32> to vector<8x1xf32>
    %274 = tpu.reciprocal %273 {approx = true} : vector<8x1xf32> -> vector<8x1xf32>
    %275 = vector.broadcast %274 : vector<8x1xf32> to vector<8x8xf32>
    %276 = arith.mulf %271, %275 : vector<8x8xf32>
    %277 = vector.extract_strided_slice %11 {offsets = [0, 40], sizes = [8, 4], strides = [1, 1]} : vector<8x48xf32> to vector<8x4xf32>
    %cst_85 = arith.constant dense<0.000000e+00> : vector<8x4xf32>
    %278 = tpu.matmul %276, %277, %cst_85 {dimension_numbers = #tpu.dot_dimension_numbers<[1], [0], [0], [1], [0, 0, 1, 1], [], []>} : vector<8x8xf32>, vector<8x4xf32>, vector<8x4xf32> -> vector<8x4xf32>
    %279 = vector.extract_strided_slice %16 {offsets = [0, 22], sizes = [8, 2], strides = [1, 1]} : vector<8x24xf32> to vector<8x2xf32>
    %280 = vector.extract_strided_slice %22 {offsets = [0, 22], sizes = [8, 2], strides = [1, 1]} : vector<8x24xf32> to vector<8x2xf32>
    %cst_86 = arith.constant dense<0.000000e+00> : vector<8x8xf32>
    %281 = tpu.matmul %279, %280, %cst_86 {dimension_numbers = #tpu.dot_dimension_numbers<[1], [1], [0], [0], [0, 0, 1, 0], [], []>} : vector<8x2xf32>, vector<8x2xf32>, vector<8x8xf32> -> vector<8x8xf32>
    %282 = vector.extract_strided_slice %19 {offsets = [0, 22], sizes = [8, 2], strides = [1, 1]} : vector<8x24xf32> to vector<8x2xf32>
    %283 = vector.extract_strided_slice %25 {offsets = [0, 22], sizes = [8, 2], strides = [1, 1]} : vector<8x24xf32> to vector<8x2xf32>
    %cst_87 = arith.constant dense<0.000000e+00> : vector<8x8xf32>
    %284 = tpu.matmul %282, %283, %cst_87 {dimension_numbers = #tpu.dot_dimension_numbers<[1], [1], [0], [0], [0, 0, 1, 0], [], []>} : vector<8x2xf32>, vector<8x2xf32>, vector<8x8xf32> -> vector<8x8xf32>
    %285 = arith.addf %281, %284 : vector<8x8xf32>
    %cst_88 = arith.constant 5.000000e-01 : f32
    %286 = vector.broadcast %cst_88 : f32 to vector<8x8xf32>
    %287 = arith.mulf %285, %286 : vector<8x8xf32>
    %288 = vector.broadcast %13 : vector<1x8xf32> to vector<8x8xf32>
    %289 = arith.addf %287, %288 : vector<8x8xf32>
    %cst_89 = arith.constant dense<0xFF800000> : vector<8xf32>
    %290 = vector.multi_reduction <maximumf>, %289, %cst_89 [1] : vector<8x8xf32> to vector<8xf32>
    %291 = vector.shape_cast %290 : vector<8xf32> to vector<8x1xf32>
    %292 = vector.broadcast %291 : vector<8x1xf32> to vector<8x8xf32>
    %293 = arith.subf %289, %292 : vector<8x8xf32>
    %294 = math.exp %293 : vector<8x8xf32>
    %cst_90 = arith.constant dense<0.000000e+00> : vector<8xf32>
    %295 = vector.multi_reduction <add>, %294, %cst_90 [1] : vector<8x8xf32> to vector<8xf32>
    %296 = vector.shape_cast %295 : vector<8xf32> to vector<8x1xf32>
    %297 = tpu.reciprocal %296 {approx = true} : vector<8x1xf32> -> vector<8x1xf32>
    %298 = vector.broadcast %297 : vector<8x1xf32> to vector<8x8xf32>
    %299 = arith.mulf %294, %298 : vector<8x8xf32>
    %300 = vector.extract_strided_slice %11 {offsets = [0, 44], sizes = [8, 4], strides = [1, 1]} : vector<8x48xf32> to vector<8x4xf32>
    %cst_91 = arith.constant dense<0.000000e+00> : vector<8x4xf32>
    %301 = tpu.matmul %299, %300, %cst_91 {dimension_numbers = #tpu.dot_dimension_numbers<[1], [0], [0], [1], [0, 0, 1, 1], [], []>} : vector<8x8xf32>, vector<8x4xf32>, vector<8x4xf32> -> vector<8x4xf32>
    %302 = tpu.concatenate %48, %71, %94, %117, %140, %163, %186, %209, %232, %255, %278, %301 in 1 : vector<8x4xf32>, vector<8x4xf32>, vector<8x4xf32>, vector<8x4xf32>, vector<8x4xf32>, vector<8x4xf32>, vector<8x4xf32>, vector<8x4xf32>, vector<8x4xf32>, vector<8x4xf32>, vector<8x4xf32>, vector<8x4xf32> -> vector<8x48xf32>
    %c0_92 = arith.constant 0 : index
    %c0_93 = arith.constant 0 : index
    %c0_94 = arith.constant 0 : index
    %c0_95 = arith.constant 0 : index
    %303 = vector.load %arg10[%c0_92, %c0_93, %c0_94, %c0_95] : memref<1x1x8x48xf32, #tpu.memory_space<vmem>>, vector<1x1x8x48xf32>
    %304 = vector.shape_cast %303 : vector<1x1x8x48xf32> to vector<8x48xf32>
    %305 = vector.shape_cast %302 : vector<8x48xf32> to vector<1x1x8x48xf32>
    tpu.vector_store %arg10[%c0_92, %c0_93, %c0_94, %c0_95], %305 {strides = array<i32>} : memref<1x1x8x48xf32, #tpu.memory_space<vmem>>, vector<1x1x8x48xf32>,
    return
  }
  func.func @transform_0(%arg0: i32, %arg1: i32) -> (i32, i32, i32) {
    %c0_i32 = arith.constant 0 : i32
    %c0_i32_0 = arith.constant 0 : i32
    return %arg0, %arg1, %c0_i32 : i32, i32, i32
  }
  func.func @transform_1(%arg0: i32, %arg1: i32) -> (i32, i32, i32) {
    %c0_i32 = arith.constant 0 : i32
    %c0_i32_0 = arith.constant 0 : i32
    return %arg0, %arg1, %c0_i32 : i32, i32, i32
  }
  func.func @transform_2(%arg0: i32, %arg1: i32) -> (i32, i32, i32) {
    %c1_i32 = arith.constant 1 : i32
    %0 = arith.subi %c1_i32, %arg0 : i32
    %c0_i32 = arith.constant 0 : i32
    %c0_i32_0 = arith.constant 0 : i32
    return %0, %arg1, %c0_i32 : i32, i32, i32
  }
  func.func @transform_3(%arg0: i32, %arg1: i32) -> (i32, i32, i32) {
    %c1_i32 = arith.constant 1 : i32
    %0 = arith.subi %c1_i32, %arg0 : i32
    %c0_i32 = arith.constant 0 : i32
    %c0_i32_0 = arith.constant 0 : i32
    return %0, %arg1, %c0_i32 : i32, i32, i32
  }
  func.func @transform_4(%arg0: i32, %arg1: i32) -> (i32, i32, i32) {
    %c1_i32 = arith.constant 1 : i32
    %0 = arith.subi %c1_i32, %arg0 : i32
    %c0_i32 = arith.constant 0 : i32
    %c0_i32_0 = arith.constant 0 : i32
    return %0, %arg1, %c0_i32 : i32, i32, i32
  }
  func.func @transform_5(%arg0: i32, %arg1: i32) -> (i32, i32) {
    %c0_i32 = arith.constant 0 : i32
    %c0_i32_0 = arith.constant 0 : i32
    %c0_i32_1 = arith.constant 0 : i32
    return %c0_i32, %c0_i32_0 : i32, i32
  }
  func.func @transform_6(%arg0: i32, %arg1: i32) -> (i32, i32) {
    %c0_i32 = arith.constant 0 : i32
    %c0_i32_0 = arith.constant 0 : i32
    %c0_i32_1 = arith.constant 0 : i32
    return %c0_i32, %c0_i32_0 : i32, i32
  }
  func.func @transform_7(%arg0: i32, %arg1: i32) -> (i32, i32, i32) {
    %c0_i32 = arith.constant 0 : i32
    %c0_i32_0 = arith.constant 0 : i32
    %c0_i32_1 = arith.constant 0 : i32
    return %arg1, %c0_i32, %c0_i32_0 : i32, i32, i32
  }
  func.func @transform_8(%arg0: i32, %arg1: i32) -> (i32, i32, i32, i32) {
    %c0_i32 = arith.constant 0 : i32
    %c0_i32_0 = arith.constant 0 : i32
    %c0_i32_1 = arith.constant 0 : i32
    return %arg0, %arg1, %c0_i32, %c0_i32_0 : i32, i32, i32, i32
  }
}

</mosaic_0001>

<bundles_post_ra>
// kernel: i_s_self_attention.2
= control target key start
LH: loop header
LB: loop body
LE: loop exit
PB: predicated region body
PF: predicated region fallthrough
CT: control target
= control target key end

     0   :  { %s1052_s24 = smov 0   ;;  %s1054_s25 = smov 0   ;;  %s1128_s0 = inlined_call_operand.vmem [shape: f32[2,16,32], index: 0, kind: input, shape index: {}]   ;;  %s1129_s1 = inlined_call_operand.vmem [shape: f32[2,32,144], index: 1, kind: input, shape index: {}]   ;;  %s1130_s2 = inlined_call_operand.vmem [shape: f32[2,1,144], index: 2, kind: input, shape index: {}]   ;;  %s1131_s3 = inlined_call_operand.vmem [shape: f32[2,16,24], index: 3, kind: output, shape index: {0}]   ;;  %s1132_s4 = inlined_call_operand.vmem [shape: f32[2,16,24], index: 4, kind: output, shape index: {1}]   ;;  %s1133_s5 = inlined_call_operand.vmem [shape: f32[2,16,24], index: 5, kind: output, shape index: {2}]   ;;  %s1134_s6 = inlined_call_operand.vmem [shape: f32[2,16,24], index: 6, kind: output, shape index: {3}]   ;;  %s1135_s7 = inlined_call_operand.vmem [shape: f32[2,16,48], index: 7, kind: output, shape index: {4}]  }
   0x1   :  { %s1056_s26 = smov 0  }
   0x2 LB: > { %s30_s27 = sadd.s32 1, %s1001_s25  ;;  %p915_p0 = scmp.ge.s32.totalorder %s1005_s26, 1  ;;  %s1005_s26 = sphi %s1056_s26, %s18_s26   ;;  %s1001_s25 = sphi %s1054_s25, %s1137_s25   ;;  %s997_s24 = sphi %s1052_s24, %s1136_s24  }
   0x3   : > { %p32_p1 = scmp.ge.s32.totalorder %s30_s27, 2  ;;  %p294_p2 = scmp.lt.s32.totalorder %s1005_s26, 3 }
   0x5   : > { %s1139_s27 = smov (%p32_p1, %s30_s27), 0  ;;  %p295_p3 = pnand %p915_p0, %p294_p2 }
   0x6   : > { %p380_p4 = scmp.lt.s32.totalorder (!%p295_p3), %s997_s24, 1  ;;  %v1007_v0 = vmov (!%p295_p3), 0.0   ;;  %vm470_vm0 = vcmask (!%p295_p3), 261120   ;;  %v460_v15 = vlaneseq (!%p295_p3)  ;;  %vm554_vm1 = vcmask (!%p295_p3), 195584   ;;  %s1008_s20 = smov (!%p295_p3), 32  }
   0x7   : > { %298 = sbr.rel (%p295_p3) target bundleno = 374 (0x176), region = 32  ;;  %541 = vmatprep.mubr.f32.mxu0 (!%p295_p3), %v1007_v0  ;;  %547 = vmatprep.mubr.f32.mxu1 (!%p295_p3), %v1007_v0  ;;  %s1009_s21 = smov (!%p295_p3), 104   ;;  %vm597_vm2 = vcmask (!%p295_p3), 392192  }
   0x8   : > { %v461_v16 = vshrl.u32 (!%p295_p3), %v460_v15, 7  ;;  %s1010_s22 = smov (!%p295_p3), 80   ;;  %s1011_s23 = smov (!%p295_p3), 56  }
   0xa   : > { %v462_v17 = vsub.s32 (!%p295_p3), 0, %v461_v16  ;;  %v466_v19 = vsub.s32 (!%p295_p3), 1, %v461_v16 }
   0xe   : > { %s1141_s24 = smov (!%p380_p4, %s997_s24), 1 }
   0xf   : > { %s936_s28 = sshll.u32 %s1141_s24, 6  ;;  %s1077_s9 = sshll.u32 %s1141_s24, 4 }
  0x10   : > { %s393_s8 = scalar_lea.vmem %s1129_s1, %s936_s28  ;;  %s387_s12 = scalar_lea.vmem %s1128_s0, %s1077_s9 }
  0x11   : > { %v451_v1 = vld [vmem:[%s393_s8 + $0x8] sm:$0xff]  ;;  %v453_v2 = vld [vmem:[%s393_s8 + $0x18] sm:$0xff]  ;;  %v450_v3 = vld [vmem:[%s393_s8] sm:$0xff]  ;;  %s920_s13 = sshll.u32 %s1141_s24, 1  ;;  %s406_s19 = scalar_lea.vmem %s1131_s3, %s1077_s9 }
  0x12   : > { %v942_v4 = vpack.c.bf16 %v453_v2, %v451_v1  ;;  %v452_v5 = vld [vmem:[%s393_s8 + $0x10] sm:$0xff]  ;;  %v455_v6 = vld [vmem:[%s393_s8 + $0x28] sm:$0xff]  ;;  %v457_v7 = vld [vmem:[%s393_s8 + $0x38] sm:$0xff]  ;;  %s397_s16 = scalar_lea.vmem %s1130_s2, %s920_s13  ;;  %s416_s29 = scalar_lea.vmem %s1132_s4, %s1077_s9 }
  0x13   : > { %v944_v8 = vpack.c.bf16 %v452_v5, %v450_v3  ;;  %v946_v9 = vpack.c.bf16 %v457_v7, %v455_v6  ;;  %v454_v10 = vld [vmem:[%s393_s8 + $0x20] sm:$0xff]  ;;  %v456_v11 = vld [vmem:[%s393_s8 + $0x30] sm:$0xff]  ;;  %v449_v14 = vld [vmem:[%s387_s12 + $0x8] sm:$0xff]  ;;  %s426_s10 = scalar_lea.vmem %s1133_s5, %s1077_s9  ;;  %s446_s13 = scalar_lea.vmem %s1135_s7, %s1077_s9 }
  0x14   : > { %943 = vmatprep.subr.bf16.mxu0 %v942_v4  ;;  %950 = vmatprep.subr.bf16.mxu1 %v942_v4  ;;  %v948_v12 = vpack.c.bf16 %v456_v11, %v454_v10  ;;  %v448_v13 = vld [vmem:[%s387_s12] sm:$0xff] }
  0x15   : > { %945 = vmatpush1.bf16.msra.mxu0 %v944_v8  ;;  %952 = vmatpush1.bf16.msra.mxu1 %v944_v8  ;;  %v458_v18 = vld [vmem:[%s397_s16] sm:$0x3]  ;;  %s436_s16 = scalar_lea.vmem %s1134_s6, %s1077_s9 }
  0x16   : > { %947 = vmatprep.subr.bf16.mxu0 %v946_v9  ;;  %951 = vmatprep.subr.bf16.mxu1 %v946_v9  ;;  %v463_v20 = vrot.slane %v458_v18, %v462_v17  ;;  %v467_v21 = vrot.slane %v458_v18, %v466_v19 }
  0x19   : > { %949 = vmatpush1.bf16.msra.mxu0 %v948_v12  ;;  %953 = vmatpush1.bf16.msra.mxu1 %v948_v12 }
  0x1c   : > { %931 = vmatmul.mubr.msk.f32.vlgmr.msra.gmra.mrb[0].mxu0 %vm470_vm0, %v448_v13  ;;  %932 = vmatmul.mubr.msk.f32.vlgmr.msra.gmra.mrb[0].mxu1 %vm470_vm0, %v449_v14 }
  0xef   : > { %v543_v22 = vpop.f32.mrb[0].mxu0  ;;  %v549_v23 = vpop.f32.mrb[0].mxu1 }
  0xf0   : > { %v544_v24 = vadd.f32 %v543_v22, %v463_v20  ;;  %v550_v25 = vadd.f32 %v549_v23, %v463_v20  ;;  %v545_v26 = vpop.f32.mrb[1].mxu0  ;;  %v551_v27 = vpop.f32.mrb[1].mxu1 }
  0xf1   : > { %v546_v28 = vadd.f32 %v545_v26, %v467_v21  ;;  %v552_v29 = vadd.f32 %v551_v27, %v467_v21 }
  0xf2   : > { %555 = vst.msk [vmem:[%s406_s19] sm:$0xff] %vm554_vm1, %v544_v24  ;;  %556 = vst.msk [vmem:[%s406_s19 + $0x8] sm:$0xff] %vm554_vm1, %v550_v25  ;;  %589 = vrot.lane.b32.xlu1 %v550_v25, %s1008_s20  ;;  %585 = vrot.lane.b32.xlu0 %v544_v24, %s1008_s20 }
  0xf6   : > { %561 = vrot.lane.b32.xlu1 %v550_v25, %s1009_s21  ;;  %559 = vrot.lane.b32.xlu0 %v544_v24, %s1009_s21 }
  0xfa   : > { %569 = vrot.lane.b32.xlu1 %v550_v25, %s1010_s22  ;;  %567 = vrot.lane.b32.xlu0 %v544_v24, %s1010_s22 }
  0xfe   : > { %591 = vrot.lane.b32.xlu1 %v552_v29, %s1008_s20  ;;  %587 = vrot.lane.b32.xlu0 %v546_v28, %s1008_s20 }
 0x102   : > { %577 = vrot.lane.b32.xlu1 %v550_v25, %s1011_s23  ;;  %575 = vrot.lane.b32.xlu0 %v544_v24, %s1011_s23 }
 0x164   : > { %v590_v30 = vpop.permute.xlu1 %589  ;;  %v586_v31 = vpop.permute.xlu0 %585 }
 0x168   : > { %v562_v32 = vpop.permute.xlu1 %561  ;;  %v560_v33 = vpop.permute.xlu0 %559 }
 0x169   : > { %566 = vst.msk [vmem:[%s416_s29 + $0x8] sm:$0xff] %vm554_vm1, %v562_v32  ;;  %565 = vst.msk [vmem:[%s416_s29] sm:$0xff] %vm554_vm1, %v560_v33 }
 0x16c   : > { %v570_v34 = vpop.permute.xlu1 %569  ;;  %v568_v35 = vpop.permute.xlu0 %567 }
 0x16d   : > { %574 = vst.msk [vmem:[%s426_s10 + $0x8] sm:$0xff] %vm554_vm1, %v570_v34  ;;  %573 = vst.msk [vmem:[%s426_s10] sm:$0xff] %vm554_vm1, %v568_v35 }
 0x170   : > { %v592_v36 = vpop.permute.xlu1 %591  ;;  %v588_v37 = vpop.permute.xlu0 %587 }
 0x171   : > { %v594_v38 = vsel %vm470_vm0, %v590_v30, %v592_v36  ;;  %v593_v39 = vsel %vm470_vm0, %v586_v31, %v588_v37 }
 0x172   : > { %599 = vst.msk [vmem:[%s446_s13 + $0x8] sm:$0xff] %vm597_vm2, %v594_v38  ;;  %598 = vst.msk [vmem:[%s446_s13] sm:$0xff] %vm597_vm2, %v593_v39 }
 0x174   : > { %v578_v40 = vpop.permute.xlu1 %577  ;;  %v576_v41 = vpop.permute.xlu0 %575 }
 0x175   : > { %582 = vst.msk [vmem:[%s436_s16 + $0x8] sm:$0xff] %vm554_vm1, %v578_v40  ;;  %581 = vst.msk [vmem:[%s436_s16] sm:$0xff] %vm554_vm1, %v576_v41 }
 0x176 PF: > { %s18_s26 = sadd.s32 1, %s1005_s26   ;;  %s1136_s24 = smov %s1001_s25 }
 0x177   : > { %p15_p5 = scmp.ge.s32.totalorder %s18_s26, 4   ;;  %s1137_s25 = smov %s1139_s27 }
 0x179   :  { %17 = sbr.rel (!%p15_p5) target bundleno = 2 (0x2), region = 116 }

// kernel: i_s_self_attention.3
= control target key start
LH: loop header
LB: loop body
LE: loop exit
PB: predicated region body
PF: predicated region fallthrough
CT: control target
= control target key end

     0   :  { %s4281_s27 = smov 0   ;;  %s4283_s28 = smov 0   ;;  %s4700_s0 = inlined_call_operand.vmem [shape: f32[2,16,24], index: 0, kind: input, shape index: {}]   ;;  %s4701_s1 = inlined_call_operand.vmem [shape: f32[2,16,24], index: 1, kind: input, shape index: {}]   ;;  %s4702_s2 = inlined_call_operand.vmem [shape: f32[2,16,24], index: 2, kind: input, shape index: {}]   ;;  %s4703_s3 = inlined_call_operand.vmem [shape: f32[2,16,24], index: 3, kind: input, shape index: {}]   ;;  %s4704_s4 = inlined_call_operand.vmem [shape: f32[2,16,48], index: 4, kind: input, shape index: {}]   ;;  %s4705_s5 = inlined_call_operand.vmem [shape: f32[8,24], index: 5, kind: input, shape index: {}]   ;;  %s4706_s6 = inlined_call_operand.vmem [shape: f32[8,24], index: 6, kind: input, shape index: {}]   ;;  %s4707_s7 = inlined_call_operand.vmem [shape: f32[2,1,8], index: 7, kind: input, shape index: {}]   ;;  %s4708_s8 = inlined_call_operand.vmem [shape: f32[2,2,8,48], index: 8, kind: output, shape index: {}]  }
   0x1   :  { %s4285_s29 = smov 0   ;;  %s4287_s30 = smov 0  }
   0x2   :  { %s4289_s9 = smov 0  }
   0x3 LB: > { %s27_s10 = sadd.s32 1, %s4196_s29  ;;  %s30_s11 = sadd.s32 1, %s4200_s30  ;;  %s4204_s9 = sphi %s4289_s9, %s18_s9   ;;  %s4200_s30 = sphi %s4287_s30, %s4712_s30   ;;  %s4196_s29 = sphi %s4285_s29, %s4711_s29   ;;  %s4192_s28 = sphi %s4283_s28, %s4710_s28   ;;  %s4188_s27 = sphi %s4281_s27, %s4709_s27  }
   0x4   : > { %p28_p0 = scmp.ge.s32.totalorder %s27_s10, 2  ;;  %p3696_p1 = scmp.ge.s32.totalorder %s4204_s9, 1 }
   0x5   : > { %p361_p2 = scmp.lt.s32.totalorder %s4204_s9, 5 }
   0x6   : > { %s4714_s10 = smov (%p28_p0, %s27_s10), 0  ;;  %s4716_s11 = smov (!%p28_p0, %s30_s11), %s4200_s30 }
   0x7   : > { %p362_p3 = pnand %p3696_p1, %p361_p2  ;;  %p32_p4 = scmp.ge.s32.totalorder %s4716_s11, 2 }
   0x8   : > { %p441_p5 = scmp.lt.s32.totalorder (!%p362_p3), %s4188_s27, 1  ;;  %s455_s12 = ssub.s32 (!%p362_p3), 1, %s4192_s28  ;;  %v4206_v0 = vmov (!%p362_p3), 0.0   ;;  %vm4207_vm0 = vmmov (!%p362_p3), 0   ;;  %v496_v1 = vld [vmem:[%s4705_s5] sm:$0xff] (!%p362_p3)  ;;  %vm516_vm1 = vcmask (!%p362_p3), 15360  }
   0x9   : > { %s4718_s11 = smov (%p32_p4, %s4716_s11), 0  ;;  %365 = sbr.rel (%p362_p3) target bundleno = 6329 (0x18b9), region = 52 }
   0xa   : > { %3844 = vmatprep.subr.mxu0 (!%p362_p3), %v4206_v0  ;;  %p456_p6 = scmp.lt.s32.totalorder (!%p362_p3), %s455_s12, 1  ;;  %p439_p7 = scmp.lt.s32.totalorder (!%p362_p3), %s4192_s28, 1  ;;  %3854 = vmatprep.subr.mxu1 (!%p362_p3), %v4206_v0  ;;  %v497_v2 = vld [vmem:[%s4706_s6] sm:$0xff] (!%p362_p3)  ;;  %vm677_vm2 = vcmask (!%p362_p3), 64512   ;;  %vm3502_vm3 = vcmask (!%p362_p3), 31744   ;;  %vm3505_vm4 = vcmask (!%p362_p3), 97280  }
   0xb   : > { %3846 = vmatprep.mubr.msk.f32.mxu0 (!%p362_p3), %vm4207_vm0, %v4206_v0  ;;  %3856 = vmatprep.mubr.msk.f32.mxu1 (!%p362_p3), %vm4207_vm0, %v4206_v0  ;;  %s4208_s23 = smov (!%p362_p3), 126   ;;  %s4215_s17 = smov (!%p362_p3), 108   ;;  %vm3507_vm5 = vcmask (!%p362_p3), 130048   ;;  %vm3509_vm6 = vcmask (!%p362_p3), 162816   ;;  %vm3511_vm7 = vcmask (!%p362_p3), 195584   ;;  %vm3513_vm8 = vcmask (!%p362_p3), 228352  }
   0xc   : > { %s4216_s18 = smov (!%p362_p3), 114   ;;  %s4218_s20 = smov (!%p362_p3), 100   ;;  %vm3515_vm9 = vcmask (!%p362_p3), 261120   ;;  %vm3517_vm10 = vcmask (!%p362_p3), 293888   ;;  %vm3519_vm11 = vcmask (!%p362_p3), 326656   ;;  %vm3521_vm12 = vcmask (!%p362_p3), 359424  }
   0xd   : > { %s4224_s25 = smov (!%p362_p3), 4   ;;  %vm3523_vm13 = vcmask (!%p362_p3), 392192  }
  0x10   : > { %s4720_s27 = smov (!%p441_p5, %s4188_s27), 1  ;;  %s4722_s12 = smov (!%p456_p6, %s455_s12), 1 }
  0x11   : > { %s4724_s28 = smov (!%p439_p7, %s4192_s28), 1  ;;  %s3701_s13 = sshll.u32 %s4722_s12, 1 }
  0x12   : > { %s461_s14 = sadd.s32 %s3701_s13, %s4720_s27  ;;  %s3697_s15 = sshll.u32 %s4724_s28, 1 }
  0x13   : > { %s4320_s16 = sshll.u32 %s461_s14, 3  ;;  %s444_s21 = sadd.s32 %s3697_s15, %s4720_s27 }
  0x14   : > { %s463_s24 = scalar_lea.vmem %s4702_s2, %s4320_s16  ;;  %s473_s28 = scalar_lea.vmem %s4703_s3, %s4320_s16 }
  0x15   : > { %v500_v3 = vld [vmem:[%s463_s24] sm:$0xff]  ;;  %s4337_s12 = sshll.u32 %s444_s21, 3  ;;  %s487_s22 = scalar_lea.vmem %s4707_s7, %s4720_s27 }
  0x16   : > { %v501_v4 = vld [vmem:[%s473_s28] sm:$0xff]  ;;  %v514_v6 = vmul.f32 %v500_v3, %v496_v1  ;;  %s446_s15 = scalar_lea.vmem %s4700_s0, %s4337_s12  ;;  %s454_s19 = scalar_lea.vmem %s4701_s1, %s4337_s12  ;;  %v510_v7 = vmul.f32 %v500_v3, %v497_v2 }
  0x17   : > { %v513_v5 = vmul.f32 %v501_v4, %v497_v2  ;;  %v511_v8 = vmul.f32 %v501_v4, %v496_v1  ;;  %v498_v9 = vld [vmem:[%s446_s15] sm:$0xff]  ;;  %s4209_s27 = smov 124   ;;  %s483_s26 = scalar_lea.vmem %s4704_s4, %s4320_s16 }
  0x18   : > { %v499_v10 = vld [vmem:[%s454_s19] sm:$0xff]  ;;  %v508_v13 = vmul.f32 %v498_v9, %v496_v1  ;;  %v504_v16 = vmul.f32 %v498_v9, %v497_v2  ;;  %s4210_s16 = smov 120   ;;  %s4211_s28 = smov 122  }
  0x19   : > { %v4347_v11 = vadd.f32 %v514_v6, %v513_v5  ;;  %v507_v12 = vmul.f32 %v499_v10, %v497_v2  ;;  %v4353_v15 = vsub.f32 %v510_v7, %v511_v8  ;;  %v505_v17 = vmul.f32 %v499_v10, %v496_v1  ;;  %v4373_v20 = vld [vmem:[%s487_s22] ss:$0 sm:$0xff]  ;;  %s4212_s13 = smov 116   ;;  %s4213_s14 = smov 118  }
  0x1a   : > { %v4393_v30 = vld [vmem:[%s483_s26] sm:$0xff]  ;;  %s4214_s15 = smov 112   ;;  %s4217_s19 = smov 104  }
  0x1b   : > { %3845 = vmatpush3.xpose.msk.msra.mxu0 %vm516_vm1, %v4347_v11  ;;  %v4351_v14 = vadd.f32 %v508_v13, %v507_v12  ;;  %v4363_v18 = vsub.f32 %v504_v16, %v505_v17  ;;  %764 = vrot.lane.b32.xlu1 %v4347_v11, %s4208_s23  ;;  %s4219_s21 = smov 110   ;;  %s4220_s22 = smov 96  }
  0x1c   : > { %3849 = vmatprep.subr.mxu0 %v4206_v0  ;;  %3855 = vmatpush3.msra.mxu1 %v4393_v30  ;;  %s4223_s24 = smov 88   ;;  %s4225_s26 = smov 8  }
  0x1d   : > { %3859 = vmatprep.subr.mxu1 %v4206_v0 }
  0x1e   : > { %3847 = vmatmul.mubr.msk.f32.vlgmr.msra.gmra.mrb[0].mxu0 %vm516_vm1, %v4351_v14 }
  0x1f   : > { %3850 = vmatpush3.xpose.msk.msra.mxu0 %vm516_vm1, %v4353_v15  ;;  %3851 = vmatprep.mubr.msk.f32.mxu0 %vm4207_vm0, %v4206_v0 }
  0x20   : > { %3869 = vmatprep.subr.mxu0 %v4206_v0  ;;  %762 = vrot.lane.b32.xlu1 %v4351_v14, %s4208_s23 }
  0x24   : > { %840 = vrot.lane.b32.xlu1 %v4363_v18, %s4208_s23 }
  0x26   : > { %3852 = vmatmul.mubr.msk.f32.vlgmr.msra.gmra.mrb[0].mxu0 %vm516_vm1, %v4363_v18 }
  0x27   : > { %3871 = vmatprep.mubr.msk.f32.mxu0 %vm4207_vm0, %v4206_v0 }
  0x28   : > { %1010 = vrot.lane.b32.xlu1 %v4347_v11, %s4209_s27 }
  0x2c   : > { %1008 = vrot.lane.b32.xlu1 %v4351_v14, %s4209_s27 }
  0x30   : > { %1088 = vrot.lane.b32.xlu1 %v4353_v15, %s4209_s27 }
  0x34   : > { %1086 = vrot.lane.b32.xlu1 %v4363_v18, %s4209_s27 }
  0x8d   : > { %v765_v31 = vpop.permute.xlu1 %764 }
  0x92   : > { %v763_v33 = vpop.permute.xlu1 %762 }
  0x96   : > { %v841_v34 = vpop.permute.xlu1 %840 }
  0x9a   : > { %v1011_v38 = vpop.permute.xlu1 %1010 }
  0x9e   : > { %v1009_v39 = vpop.permute.xlu1 %1008 }
  0xa2   : > { %v1089_v40 = vpop.permute.xlu1 %1088 }
  0xa6   : > { %v1087_v41 = vpop.permute.xlu1 %1086 }
  0xf9   : > { %v665_v19 = vpop.f32.mrb[0].mxu0 }
  0xfa   : > { %v669_v21 = vmul.f32 0.5, %v665_v19  ;;  %v3853_v22 = vpop.f32.mrb[1].mxu0 }
  0xfc   : > { %v676_v23 = vadd.f32 %v4373_v20, %v669_v21 }
  0xfe   : > { %v678_v24 = vsel %vm677_vm2, %v676_v23, -inf }
  0xff   : > { %679 = vmax.xlane.f32.xlu0 %v678_v24 }
 0x18c   : > { %v680_v25 = vpop.xlane.xlu0 %679 }
 0x18d   : > { %v681_v26 = vsub.f32 %v676_v23, %v680_v25 }
 0x18f   : > { %v682_v27 = vmul.f32 1.442695, %v681_v26 }
 0x191   : > { %4118 = vpow2.f32 %v682_v27 }
 0x19b   : > { %v4119_v28 = vpop.eup %4118 }
 0x19c   : > { %v684_v29 = vsel %vm677_vm2, %v4119_v28, 0.0 }
 0x19d   : > { %685 = vadd.xlane.f32.xlu0 %v684_v29 }
 0x1b3   : > { %842 = vrot.lane.b32.xlu0 %v4353_v15, %s4208_s23  ;;  %s4221_s23 = smov 92  }
 0x22a   : > { %v686_v32 = vpop.xlane.xlu0 %685 }
 0x22b   : > { %4120 = vrcp.f32 %v686_v32 }
 0x22e   : > { %v843_v37 = vpop.permute.xlu0 %842 }
 0x235   : > { %v4121_v35 = vpop.eup %4120 }
 0x236   : > { %v688_v36 = vmul.f32 %v4121_v35, %v4119_v28 }
 0x238   : > { %3857 = vmatmul.mubr.msk.f32.vlgmr.msra.gmra.mrb[0].mxu1 %vm677_vm2, %v688_v36 }
 0x239   : > { %3860 = vmatpush3.xpose.msk.msra.mxu1 %vm516_vm1, %v765_v31  ;;  %3861 = vmatprep.mubr.msk.f32.mxu1 %vm4207_vm0, %v4206_v0 }
 0x23a   : > { %3864 = vmatprep.subr.mxu1 %v4206_v0 }
 0x23c   : > { %3862 = vmatmul.mubr.msk.f32.vlgmr.msra.gmra.mrb[2].mxu1 %vm516_vm1, %v763_v33 }
 0x23d   : > { %3865 = vmatpush3.xpose.msk.msra.mxu1 %vm516_vm1, %v843_v37  ;;  %3866 = vmatprep.mubr.msk.f32.mxu1 %vm4207_vm0, %v4206_v0 }
 0x23e   : > { %3874 = vmatprep.subr.mxu1 %v4206_v0 }
 0x244   : > { %3867 = vmatmul.mubr.msk.f32.vlgmr.msra.gmra.mrb[2].mxu1 %vm516_vm1, %v841_v34 }
 0x245   : > { %3875 = vmatpush3.xpose.msk.msra.mxu1 %vm516_vm1, %v1011_v38  ;;  %3876 = vmatprep.mubr.msk.f32.mxu1 %vm4207_vm0, %v4206_v0 }
 0x246   : > { %3879 = vmatprep.subr.mxu1 %v4206_v0 }
 0x248   : > { %3877 = vmatmul.mubr.msk.f32.vlgmr.msra.gmra.mrb[4].mxu1 %vm516_vm1, %v1009_v39 }
 0x249   : > { %3880 = vmatpush3.xpose.msk.msra.mxu1 %vm516_vm1, %v1089_v40  ;;  %3881 = vmatprep.mubr.msk.f32.mxu1 %vm4207_vm0, %v4206_v0 }
 0x24a   : > { %3899 = vmatprep.subr.mxu1 %v4206_v0 }
 0x250   : > { %3882 = vmatmul.mubr.msk.f32.vlgmr.msra.gmra.mrb[4].mxu1 %vm516_vm1, %v1087_v41 }
 0x251   : > { %3901 = vmatprep.mubr.msk.f32.mxu1 %vm4207_vm0, %v4206_v0 }
 0x30b   : > { %v4421_v42 = vpop.f32.mrb[0].mxu1 }
 0x30c   : > { %v3858_v43 = vpop.f32.mrb[1].mxu1 }
 0x317   : > { %v914_v44 = vpop.f32.mrb[2].mxu1 }
 0x318   : > { %v918_v45 = vmul.f32 0.5, %v914_v44  ;;  %v3868_v46 = vpop.f32.mrb[3].mxu1 }
 0x31a   : > { %v919_v47 = vadd.f32 %v4373_v20, %v918_v45 }
 0x31c   : > { %v920_v48 = vsel %vm677_vm2, %v919_v47, -inf }
 0x31d   : > { %921 = vmax.xlane.f32.xlu1 %v920_v48 }
 0x323   : > { %v1160_v49 = vpop.f32.mrb[4].mxu1 }
 0x324   : > { %v1164_v50 = vmul.f32 0.5, %v1160_v49  ;;  %v3883_v51 = vpop.f32.mrb[5].mxu1 }
 0x326   : > { %v1165_v52 = vadd.f32 %v4373_v20, %v1164_v50 }
 0x328   : > { %v1166_v53 = vsel %vm677_vm2, %v1165_v52, -inf }
 0x329   : > { %1167 = vmax.xlane.f32.xlu0 %v1166_v53 }
 0x32e   : > { %1177 = vrot.lane.b32.xlu1 %v4393_v30, %s4210_s16 }
 0x332   : > { %1255 = vrot.lane.b32.xlu1 %v4347_v11, %s4211_s28 }
 0x3aa   : > { %v922_v54 = vpop.xlane.xlu1 %921 }
 0x3ab   : > { %v923_v55 = vsub.f32 %v919_v47, %v922_v54 }
 0x3ad   : > { %v924_v56 = vmul.f32 1.442695, %v923_v55 }
 0x3ae   : > { %v1178_v2 = vpop.permute.xlu1 %1177 }
 0x3af   : > { %4122 = vpow2.f32 %v924_v56 }
 0x3b2   : > { %v1256_v4 = vpop.permute.xlu1 %1255 }
 0x3b6   : > { %v1168_v57 = vpop.xlane.xlu0 %1167 }
 0x3b7   : > { %v1169_v58 = vsub.f32 %v1165_v52, %v1168_v57 }
 0x3b9   : > { %v4123_v59 = vpop.eup %4122  ;;  %v1170_v60 = vmul.f32 1.442695, %v1169_v58 }
 0x3ba   : > { %v926_v61 = vsel %vm677_vm2, %v4123_v59, 0.0 }
 0x3bb   : > { %4124 = vpow2.f32 %v1170_v60  ;;  %927 = vadd.xlane.f32.xlu0 %v926_v61 }
 0x3c5   : > { %v4125_v62 = vpop.eup %4124 }
 0x3c6   : > { %v1172_v63 = vsel %vm677_vm2, %v4125_v62, 0.0 }
 0x3c7   : > { %1173 = vadd.xlane.f32.xlu1 %v1172_v63 }
 0x3d1   : > { %932 = vrot.lane.b32.xlu0 %v4393_v30, %s4209_s27  ;;  %s4222_s27 = smov 106  }
 0x3d5   : > { %1253 = vrot.lane.b32.xlu0 %v4351_v14, %s4211_s28 }
 0x3d8   : > { %1333 = vrot.lane.b32.xlu1 %v4353_v15, %s4211_s28 }
 0x3d9   : > { %1331 = vrot.lane.b32.xlu0 %v4363_v18, %s4211_s28  ;;  %s4227_s28 = smov 24  }
 0x448   : > { %v928_v1 = vpop.xlane.xlu0 %927 }
 0x449   : > { %4126 = vrcp.f32 %v928_v1 }
 0x44c   : > { %v933_v3 = vpop.permute.xlu0 %932 }
 0x44d   : > { %3870 = vmatpush3.msra.mxu0 %v933_v3 }
 0x44e   : > { %3884 = vmatprep.subr.mxu0 %v4206_v0 }
 0x450   : > { %v1254_v10 = vpop.permute.xlu0 %1253 }
 0x453   : > { %v4127_v5 = vpop.eup %4126 }
 0x454   : > { %v930_v6 = vmul.f32 %v4127_v5, %v4123_v59  ;;  %v1174_v7 = vpop.xlane.xlu1 %1173  ;;  %v1332_v13 = vpop.permute.xlu0 %1331 }
 0x455   : > { %4128 = vrcp.f32 %v1174_v7 }
 0x456   : > { %3872 = vmatmul.mubr.msk.f32.vlgmr.msra.gmra.mrb[2].mxu0 %vm677_vm2, %v930_v6 }
 0x457   : > { %3885 = vmatpush3.msra.mxu0 %v1178_v2  ;;  %3886 = vmatprep.mubr.msk.f32.mxu0 %vm4207_vm0, %v4206_v0 }
 0x458   : > { %3889 = vmatprep.subr.mxu0 %v4206_v0  ;;  %v1334_v12 = vpop.permute.xlu1 %1333 }
 0x45f   : > { %v4129_v8 = vpop.eup %4128 }
 0x460   : > { %v1176_v9 = vmul.f32 %v4129_v8, %v4125_v62 }
 0x462   : > { %3887 = vmatmul.mubr.msk.f32.vlgmr.msra.gmra.mrb[4].mxu0 %vm677_vm2, %v1176_v9 }
 0x463   : > { %3890 = vmatpush3.xpose.msk.msra.mxu0 %vm516_vm1, %v1256_v4  ;;  %3891 = vmatprep.mubr.msk.f32.mxu0 %vm4207_vm0, %v4206_v0 }
 0x464   : > { %3894 = vmatprep.subr.mxu0 %v4206_v0 }
 0x466   : > { %3892 = vmatmul.mubr.msk.f32.vlgmr.msra.gmra.mrb[6].mxu0 %vm516_vm1, %v1254_v10 }
 0x467   : > { %3895 = vmatpush3.xpose.msk.msra.mxu0 %vm516_vm1, %v1334_v12  ;;  %3896 = vmatprep.mubr.msk.f32.mxu0 %vm4207_vm0, %v4206_v0 }
 0x468   : > { %3914 = vmatprep.subr.mxu0 %v4206_v0 }
 0x46e   : > { %3897 = vmatmul.mubr.msk.f32.vlgmr.msra.gmra.mrb[6].mxu0 %vm516_vm1, %v1332_v13 }
 0x46f   : > { %3916 = vmatprep.mubr.msk.f32.mxu0 %vm4207_vm0, %v4206_v0 }
 0x529   : > { %v4455_v16 = vpop.f32.mrb[2].mxu0 }
 0x52a   : > { %v3873_v17 = vpop.f32.mrb[3].mxu0 }
 0x535   : > { %v4457_v19 = vpop.f32.mrb[4].mxu0 }
 0x536   : > { %v3888_v21 = vpop.f32.mrb[5].mxu0 }
 0x541   : > { %v1405_v22 = vpop.f32.mrb[6].mxu0 }
 0x542   : > { %v1409_v23 = vmul.f32 0.5, %v1405_v22  ;;  %v3898_v24 = vpop.f32.mrb[7].mxu0 }
 0x544   : > { %v1410_v25 = vadd.f32 %v4373_v20, %v1409_v23 }
 0x546   : > { %v1411_v26 = vsel %vm677_vm2, %v1410_v25, -inf }
 0x547   : > { %1412 = vmax.xlane.f32.xlu1 %v1411_v26 }
 0x558   : > { %1500 = vrot.lane.b32.xlu1 %v4347_v11, %s4210_s16 }
 0x55c   : > { %1498 = vrot.lane.b32.xlu1 %v4351_v14, %s4210_s16 }
 0x560   : > { %1576 = vrot.lane.b32.xlu1 %v4363_v18, %s4210_s16 }
 0x564   : > { %1745 = vrot.lane.b32.xlu1 %v4347_v11, %s4213_s14 }
 0x5d4   : > { %v1413_v27 = vpop.xlane.xlu1 %1412 }
 0x5d5   : > { %v1414_v28 = vsub.f32 %v1410_v25, %v1413_v27 }
 0x5d7   : > { %v1415_v29 = vmul.f32 1.442695, %v1414_v28 }
 0x5d8   : > { %v1501_v35 = vpop.permute.xlu1 %1500 }
 0x5d9   : > { %4130 = vpow2.f32 %v1415_v29 }
 0x5dc   : > { %v1499_v38 = vpop.permute.xlu1 %1498 }
 0x5e0   : > { %v1577_v40 = vpop.permute.xlu1 %1576 }
 0x5e3   : > { %v4131_v31 = vpop.eup %4130 }
 0x5e4   : > { %v1417_v32 = vsel %vm677_vm2, %v4131_v31, 0.0  ;;  %v1746_v55 = vpop.permute.xlu1 %1745 }
 0x5e5   : > { %1418 = vadd.xlane.f32.xlu0 %v1417_v32 }
 0x5fb   : > { %1422 = vrot.lane.b32.xlu0 %v4393_v30, %s4212_s13 }
 0x5ff   : > { %1578 = vrot.lane.b32.xlu0 %v4353_v15, %s4210_s16  ;;  %s4226_s16 = smov 16  }
 0x672   : > { %v1419_v33 = vpop.xlane.xlu0 %1418 }
 0x673   : > { %4132 = vrcp.f32 %v1419_v33 }
 0x676   : > { %v1423_v34 = vpop.permute.xlu0 %1422 }
 0x677   : > { %3900 = vmatpush3.msra.mxu1 %v1423_v34 }
 0x678   : > { %3904 = vmatprep.subr.mxu1 %v4206_v0 }
 0x67a   : > { %v1579_v39 = vpop.permute.xlu0 %1578 }
 0x67d   : > { %v4133_v36 = vpop.eup %4132 }
 0x67e   : > { %v1421_v37 = vmul.f32 %v4133_v36, %v4131_v31 }
 0x680   : > { %3902 = vmatmul.mubr.msk.f32.vlgmr.msra.gmra.mrb[6].mxu1 %vm677_vm2, %v1421_v37 }
 0x681   : > { %3905 = vmatpush3.xpose.msk.msra.mxu1 %vm516_vm1, %v1501_v35  ;;  %3906 = vmatprep.mubr.msk.f32.mxu1 %vm4207_vm0, %v4206_v0 }
 0x682   : > { %3909 = vmatprep.subr.mxu1 %v4206_v0 }
 0x684   : > { %3907 = vmatmul.mubr.msk.f32.vlgmr.msra.gmra.mrb[8].mxu1 %vm516_vm1, %v1499_v38 }
 0x685   : > { %3910 = vmatpush3.xpose.msk.msra.mxu1 %vm516_vm1, %v1579_v39  ;;  %3911 = vmatprep.mubr.msk.f32.mxu1 %vm4207_vm0, %v4206_v0 }
 0x686   : > { %3929 = vmatprep.subr.mxu1 %v4206_v0 }
 0x68c   : > { %3912 = vmatmul.mubr.msk.f32.vlgmr.msra.gmra.mrb[8].mxu1 %vm516_vm1, %v1577_v40 }
 0x68d   : > { %3931 = vmatprep.mubr.msk.f32.mxu1 %vm4207_vm0, %v4206_v0 }
 0x753   : > { %v4487_v41 = vpop.f32.mrb[6].mxu1 }
 0x754   : > { %v3903_v43 = vpop.f32.mrb[7].mxu1 }
 0x75f   : > { %v1650_v44 = vpop.f32.mrb[8].mxu1 }
 0x760   : > { %v1654_v45 = vmul.f32 0.5, %v1650_v44  ;;  %v3913_v46 = vpop.f32.mrb[9].mxu1 }
 0x762   : > { %v1655_v47 = vadd.f32 %v4373_v20, %v1654_v45 }
 0x764   : > { %v1656_v48 = vsel %vm677_vm2, %v1655_v47, -inf }
 0x765   : > { %1657 = vmax.xlane.f32.xlu0 %v1656_v48 }
 0x77b   : > { %1667 = vrot.lane.b32.xlu0 %v4393_v30, %s4214_s15 }
 0x77f   : > { %1743 = vrot.lane.b32.xlu0 %v4351_v14, %s4213_s14 }
 0x783   : > { %1821 = vrot.lane.b32.xlu0 %v4363_v18, %s4213_s14 }
 0x7f2   : > { %v1658_v49 = vpop.xlane.xlu0 %1657 }
 0x7f3   : > { %v1659_v50 = vsub.f32 %v1655_v47, %v1658_v49 }
 0x7f5   : > { %v1660_v51 = vmul.f32 1.442695, %v1659_v50 }
 0x7f6   : > { %v1668_v54 = vpop.permute.xlu0 %1667 }
 0x7f7   : > { %4134 = vpow2.f32 %v1660_v51  ;;  %3915 = vmatpush3.msra.mxu0 %v1668_v54 }
 0x7f8   : > { %3919 = vmatprep.subr.mxu0 %v4206_v0 }
 0x7fa   : > { %v1744_v59 = vpop.permute.xlu0 %1743 }
 0x7fe   : > { %v1822_v61 = vpop.permute.xlu0 %1821 }
 0x801   : > { %v4135_v52 = vpop.eup %4134 }
 0x802   : > { %v1662_v53 = vsel %vm677_vm2, %v4135_v52, 0.0 }
 0x803   : > { %1663 = vadd.xlane.f32.xlu1 %v1662_v53 }
 0x814   : > { %1823 = vrot.lane.b32.xlu1 %v4353_v15, %s4213_s14  ;;  %s4229_s14 = smov 40  }
 0x890   : > { %v1664_v56 = vpop.xlane.xlu1 %1663 }
 0x891   : > { %4136 = vrcp.f32 %v1664_v56 }
 0x894   : > { %v1824_v60 = vpop.permute.xlu1 %1823 }
 0x89b   : > { %v4137_v57 = vpop.eup %4136 }
 0x89c   : > { %v1666_v58 = vmul.f32 %v4137_v57, %v4135_v52 }
 0x89e   : > { %3917 = vmatmul.mubr.msk.f32.vlgmr.msra.gmra.mrb[8].mxu0 %vm677_vm2, %v1666_v58 }
 0x89f   : > { %3920 = vmatpush3.xpose.msk.msra.mxu0 %vm516_vm1, %v1746_v55  ;;  %3921 = vmatprep.mubr.msk.f32.mxu0 %vm4207_vm0, %v4206_v0 }
 0x8a0   : > { %3924 = vmatprep.subr.mxu0 %v4206_v0 }
 0x8a2   : > { %3922 = vmatmul.mubr.msk.f32.vlgmr.msra.gmra.mrb[10].mxu0 %vm516_vm1, %v1744_v59 }
 0x8a3   : > { %3925 = vmatpush3.xpose.msk.msra.mxu0 %vm516_vm1, %v1824_v60  ;;  %3926 = vmatprep.mubr.msk.f32.mxu0 %vm4207_vm0, %v4206_v0 }
 0x8a4   : > { %3944 = vmatprep.subr.mxu0 %v4206_v0 }
 0x8aa   : > { %3927 = vmatmul.mubr.msk.f32.vlgmr.msra.gmra.mrb[10].mxu0 %vm516_vm1, %v1822_v61 }
 0x8ab   : > { %3946 = vmatprep.mubr.msk.f32.mxu0 %vm4207_vm0, %v4206_v0 }
 0x971   : > { %v4511_v62 = vpop.f32.mrb[8].mxu0 }
 0x972   : > { %v3918_v63 = vpop.f32.mrb[9].mxu0 }
 0x97d   : > { %v1895_v1 = vpop.f32.mrb[10].mxu0 }
 0x97e   : > { %v1899_v2 = vmul.f32 0.5, %v1895_v1  ;;  %v3928_v3 = vpop.f32.mrb[11].mxu0 }
 0x980   : > { %v1900_v4 = vadd.f32 %v4373_v20, %v1899_v2 }
 0x982   : > { %v1901_v5 = vsel %vm677_vm2, %v1900_v4, -inf }
 0x983   : > { %1902 = vmax.xlane.f32.xlu1 %v1901_v5 }
 0x994   : > { %1990 = vrot.lane.b32.xlu1 %v4347_v11, %s4212_s13 }
 0x998   : > { %1988 = vrot.lane.b32.xlu1 %v4351_v14, %s4212_s13 }
 0x99c   : > { %2066 = vrot.lane.b32.xlu1 %v4363_v18, %s4212_s13 }
 0x9a0   : > { %2235 = vrot.lane.b32.xlu1 %v4347_v11, %s4216_s18 }
 0xa10   : > { %v1903_v6 = vpop.xlane.xlu1 %1902 }
 0xa11   : > { %v1904_v7 = vsub.f32 %v1900_v4, %v1903_v6 }
 0xa13   : > { %v1905_v8 = vmul.f32 1.442695, %v1904_v7 }
 0xa14   : > { %v1991_v17 = vpop.permute.xlu1 %1990 }
 0xa15   : > { %4138 = vpow2.f32 %v1905_v8 }
 0xa18   : > { %v1989_v23 = vpop.permute.xlu1 %1988 }
 0xa1c   : > { %v2067_v25 = vpop.permute.xlu1 %2066 }
 0xa1f   : > { %v4139_v9 = vpop.eup %4138 }
 0xa20   : > { %v1907_v10 = vsel %vm677_vm2, %v4139_v9, 0.0  ;;  %v2236_v40 = vpop.permute.xlu1 %2235 }
 0xa21   : > { %1908 = vadd.xlane.f32.xlu0 %v1907_v10 }
 0xa37   : > { %1912 = vrot.lane.b32.xlu0 %v4393_v30, %s4215_s17 }
 0xa3b   : > { %2068 = vrot.lane.b32.xlu0 %v4353_v15, %s4212_s13  ;;  %s4228_s13 = smov 32  }
 0xaae   : > { %v1909_v12 = vpop.xlane.xlu0 %1908 }
 0xaaf   : > { %4140 = vrcp.f32 %v1909_v12 }
 0xab2   : > { %v1913_v13 = vpop.permute.xlu0 %1912 }
 0xab3   : > { %3930 = vmatpush3.msra.mxu1 %v1913_v13 }
 0xab4   : > { %3934 = vmatprep.subr.mxu1 %v4206_v0 }
 0xab6   : > { %v2069_v24 = vpop.permute.xlu0 %2068 }
 0xab9   : > { %v4141_v21 = vpop.eup %4140 }
 0xaba   : > { %v1911_v22 = vmul.f32 %v4141_v21, %v4139_v9 }
 0xabc   : > { %3932 = vmatmul.mubr.msk.f32.vlgmr.msra.gmra.mrb[10].mxu1 %vm677_vm2, %v1911_v22 }
 0xabd   : > { %3935 = vmatpush3.xpose.msk.msra.mxu1 %vm516_vm1, %v1991_v17  ;;  %3936 = vmatprep.mubr.msk.f32.mxu1 %vm4207_vm0, %v4206_v0 }
 0xabe   : > { %3939 = vmatprep.subr.mxu1 %v4206_v0 }
 0xac0   : > { %3937 = vmatmul.mubr.msk.f32.vlgmr.msra.gmra.mrb[12].mxu1 %vm516_vm1, %v1989_v23 }
 0xac1   : > { %3940 = vmatpush3.xpose.msk.msra.mxu1 %vm516_vm1, %v2069_v24  ;;  %3941 = vmatprep.mubr.msk.f32.mxu1 %vm4207_vm0, %v4206_v0 }
 0xac2   : > { %3959 = vmatprep.subr.mxu1 %v4206_v0 }
 0xac8   : > { %3942 = vmatmul.mubr.msk.f32.vlgmr.msra.gmra.mrb[12].mxu1 %vm516_vm1, %v2067_v25 }
 0xac9   : > { %3961 = vmatprep.mubr.msk.f32.mxu1 %vm4207_vm0, %v4206_v0 }
 0xb8f   : > { %v4541_v26 = vpop.f32.mrb[10].mxu1 }
 0xb90   : > { %v3933_v27 = vpop.f32.mrb[11].mxu1 }
 0xb9b   : > { %v2140_v28 = vpop.f32.mrb[12].mxu1 }
 0xb9c   : > { %v2144_v29 = vmul.f32 0.5, %v2140_v28  ;;  %v3943_v31 = vpop.f32.mrb[13].mxu1 }
 0xb9e   : > { %v2145_v32 = vadd.f32 %v4373_v20, %v2144_v29 }
 0xba0   : > { %v2146_v33 = vsel %vm677_vm2, %v2145_v32, -inf }
 0xba1   : > { %2147 = vmax.xlane.f32.xlu0 %v2146_v33 }
 0xbb7   : > { %2157 = vrot.lane.b32.xlu0 %v4393_v30, %s4217_s19  ;;  %s4233_s19 = smov 28  }
 0xbbb   : > { %2233 = vrot.lane.b32.xlu0 %v4351_v14, %s4216_s18 }
 0xbbf   : > { %2311 = vrot.lane.b32.xlu0 %v4363_v18, %s4216_s18 }
 0xc2e   : > { %v2148_v34 = vpop.xlane.xlu0 %2147 }
 0xc2f   : > { %v2149_v35 = vsub.f32 %v2145_v32, %v2148_v34 }
 0xc31   : > { %v2150_v36 = vmul.f32 1.442695, %v2149_v35 }
 0xc32   : > { %v2158_v39 = vpop.permute.xlu0 %2157 }
 0xc33   : > { %4142 = vpow2.f32 %v2150_v36  ;;  %3945 = vmatpush3.msra.mxu0 %v2158_v39 }
 0xc34   : > { %3949 = vmatprep.subr.mxu0 %v4206_v0 }
 0xc36   : > { %v2234_v46 = vpop.permute.xlu0 %2233 }
 0xc3a   : > { %v2312_v48 = vpop.permute.xlu0 %2311 }
 0xc3d   : > { %v4143_v37 = vpop.eup %4142 }
 0xc3e   : > { %v2152_v38 = vsel %vm677_vm2, %v4143_v37, 0.0 }
 0xc3f   : > { %2153 = vadd.xlane.f32.xlu1 %v2152_v38 }
 0xc50   : > { %2313 = vrot.lane.b32.xlu1 %v4353_v15, %s4216_s18  ;;  %s4232_s18 = smov 20  }
 0xccc   : > { %v2154_v43 = vpop.xlane.xlu1 %2153 }
 0xccd   : > { %4144 = vrcp.f32 %v2154_v43 }
 0xcd0   : > { %v2314_v47 = vpop.permute.xlu1 %2313 }
 0xcd7   : > { %v4145_v44 = vpop.eup %4144 }
 0xcd8   : > { %v2156_v45 = vmul.f32 %v4145_v44, %v4143_v37 }
 0xcda   : > { %3947 = vmatmul.mubr.msk.f32.vlgmr.msra.gmra.mrb[12].mxu0 %vm677_vm2, %v2156_v45 }
 0xcdb   : > { %3950 = vmatpush3.xpose.msk.msra.mxu0 %vm516_vm1, %v2236_v40  ;;  %3951 = vmatprep.mubr.msk.f32.mxu0 %vm4207_vm0, %v4206_v0 }
 0xcdc   : > { %3954 = vmatprep.subr.mxu0 %v4206_v0 }
 0xcde   : > { %3952 = vmatmul.mubr.msk.f32.vlgmr.msra.gmra.mrb[14].mxu0 %vm516_vm1, %v2234_v46 }
 0xcdf   : > { %3955 = vmatpush3.xpose.msk.msra.mxu0 %vm516_vm1, %v2314_v47  ;;  %3956 = vmatprep.mubr.msk.f32.mxu0 %vm4207_vm0, %v4206_v0 }
 0xce0   : > { %3974 = vmatprep.subr.mxu0 %v4206_v0 }
 0xce6   : > { %3957 = vmatmul.mubr.msk.f32.vlgmr.msra.gmra.mrb[14].mxu0 %vm516_vm1, %v2312_v48 }
 0xce7   : > { %3976 = vmatprep.mubr.msk.f32.mxu0 %vm4207_vm0, %v4206_v0 }
 0xdad   : > { %v4564_v49 = vpop.f32.mrb[12].mxu0 }
 0xdae   : > { %v3948_v50 = vpop.f32.mrb[13].mxu0 }
 0xdb9   : > { %v2385_v51 = vpop.f32.mrb[14].mxu0 }
 0xdba   : > { %v2389_v52 = vmul.f32 0.5, %v2385_v51  ;;  %v3958_v53 = vpop.f32.mrb[15].mxu0 }
 0xdbc   : > { %v2390_v54 = vadd.f32 %v4373_v20, %v2389_v52 }
 0xdbe   : > { %v2391_v55 = vsel %vm677_vm2, %v2390_v54, -inf }
 0xdbf   : > { %2392 = vmax.xlane.f32.xlu1 %v2391_v55 }
 0xdd0   : > { %2480 = vrot.lane.b32.xlu1 %v4347_v11, %s4214_s15 }
 0xdd4   : > { %2478 = vrot.lane.b32.xlu1 %v4351_v14, %s4214_s15 }
 0xdd8   : > { %2556 = vrot.lane.b32.xlu1 %v4363_v18, %s4214_s15 }
 0xddc   : > { %2725 = vrot.lane.b32.xlu1 %v4347_v11, %s4219_s21 }
 0xe4c   : > { %v2393_v56 = vpop.xlane.xlu1 %2392 }
 0xe4d   : > { %v2394_v57 = vsub.f32 %v2390_v54, %v2393_v56 }
 0xe4f   : > { %v2395_v58 = vmul.f32 1.442695, %v2394_v57 }
 0xe50   : > { %v2481_v1 = vpop.permute.xlu1 %2480 }
 0xe51   : > { %4146 = vpow2.f32 %v2395_v58 }
 0xe54   : > { %v2479_v4 = vpop.permute.xlu1 %2478 }
 0xe58   : > { %v2557_v6 = vpop.permute.xlu1 %2556 }
 0xe5b   : > { %v4147_v59 = vpop.eup %4146 }
 0xe5c   : > { %v2397_v60 = vsel %vm677_vm2, %v4147_v59, 0.0  ;;  %v2726_v28 = vpop.permute.xlu1 %2725 }
 0xe5d   : > { %2398 = vadd.xlane.f32.xlu0 %v2397_v60 }
 0xe73   : > { %2402 = vrot.lane.b32.xlu0 %v4393_v30, %s4218_s20  ;;  %s4234_s20 = smov 36  }
 0xe77   : > { %2558 = vrot.lane.b32.xlu0 %v4353_v15, %s4214_s15  ;;  %s4230_s15 = smov 84  }
 0xeea   : > { %v2399_v61 = vpop.xlane.xlu0 %2398 }
 0xeeb   : > { %4148 = vrcp.f32 %v2399_v61 }
 0xeee   : > { %v2403_v63 = vpop.permute.xlu0 %2402 }
 0xeef   : > { %3960 = vmatpush3.msra.mxu1 %v2403_v63 }
 0xef0   : > { %3964 = vmatprep.subr.mxu1 %v4206_v0 }
 0xef2   : > { %v2559_v5 = vpop.permute.xlu0 %2558 }
 0xef5   : > { %v4149_v2 = vpop.eup %4148 }
 0xef6   : > { %v2401_v3 = vmul.f32 %v4149_v2, %v4147_v59 }
 0xef8   : > { %3962 = vmatmul.mubr.msk.f32.vlgmr.msra.gmra.mrb[14].mxu1 %vm677_vm2, %v2401_v3 }
 0xef9   : > { %3965 = vmatpush3.xpose.msk.msra.mxu1 %vm516_vm1, %v2481_v1  ;;  %3966 = vmatprep.mubr.msk.f32.mxu1 %vm4207_vm0, %v4206_v0 }
 0xefa   : > { %3969 = vmatprep.subr.mxu1 %v4206_v0 }
 0xefc   : > { %3967 = vmatmul.mubr.msk.f32.vlgmr.msra.gmra.mrb[16].mxu1 %vm516_vm1, %v2479_v4 }
 0xefd   : > { %3970 = vmatpush3.xpose.msk.msra.mxu1 %vm516_vm1, %v2559_v5  ;;  %3971 = vmatprep.mubr.msk.f32.mxu1 %vm4207_vm0, %v4206_v0 }
 0xefe   : > { %3989 = vmatprep.subr.mxu1 %v4206_v0 }
 0xf04   : > { %3972 = vmatmul.mubr.msk.f32.vlgmr.msra.gmra.mrb[16].mxu1 %vm516_vm1, %v2557_v6 }
 0xf05   : > { %3991 = vmatprep.mubr.msk.f32.mxu1 %vm4207_vm0, %v4206_v0 }
 0xfcb   : > { %v4593_v7 = vpop.f32.mrb[14].mxu1 }
 0xfcc   : > { %v3963_v8 = vpop.f32.mrb[15].mxu1 }
 0xfd7   : > { %v2630_v9 = vpop.f32.mrb[16].mxu1 }
 0xfd8   : > { %v2634_v10 = vmul.f32 0.5, %v2630_v9  ;;  %v3973_v12 = vpop.f32.mrb[17].mxu1 }
 0xfda   : > { %v2635_v13 = vadd.f32 %v4373_v20, %v2634_v10 }
 0xfdc   : > { %v2636_v17 = vsel %vm677_vm2, %v2635_v13, -inf }
 0xfdd   : > { %2637 = vmax.xlane.f32.xlu0 %v2636_v17 }
 0xff3   : > { %2647 = vrot.lane.b32.xlu0 %v4393_v30, %s4220_s22 }
 0xff7   : > { %2723 = vrot.lane.b32.xlu0 %v4351_v14, %s4219_s21 }
 0xffb   : > { %2801 = vrot.lane.b32.xlu0 %v4363_v18, %s4219_s21 }
0x106a   : > { %v2638_v21 = vpop.xlane.xlu0 %2637 }
0x106b   : > { %v2639_v22 = vsub.f32 %v2635_v13, %v2638_v21 }
0x106d   : > { %v2640_v23 = vmul.f32 1.442695, %v2639_v22 }
0x106e   : > { %v2648_v27 = vpop.permute.xlu0 %2647 }
0x106f   : > { %4150 = vpow2.f32 %v2640_v23  ;;  %3975 = vmatpush3.msra.mxu0 %v2648_v27 }
0x1070   : > { %3979 = vmatprep.subr.mxu0 %v4206_v0 }
0x1072   : > { %v2724_v33 = vpop.permute.xlu0 %2723 }
0x1076   : > { %v2802_v35 = vpop.permute.xlu0 %2801 }
0x1079   : > { %v4151_v24 = vpop.eup %4150 }
0x107a   : > { %v2642_v25 = vsel %vm677_vm2, %v4151_v24, 0.0 }
0x107b   : > { %2643 = vadd.xlane.f32.xlu1 %v2642_v25 }
0x108c   : > { %2803 = vrot.lane.b32.xlu1 %v4353_v15, %s4219_s21  ;;  %s4235_s21 = smov 44  }
0x1108   : > { %v2644_v29 = vpop.xlane.xlu1 %2643 }
0x1109   : > { %4152 = vrcp.f32 %v2644_v29 }
0x110c   : > { %v2804_v34 = vpop.permute.xlu1 %2803 }
0x1113   : > { %v4153_v31 = vpop.eup %4152 }
0x1114   : > { %v2646_v32 = vmul.f32 %v4153_v31, %v4151_v24 }
0x1116   : > { %3977 = vmatmul.mubr.msk.f32.vlgmr.msra.gmra.mrb[16].mxu0 %vm677_vm2, %v2646_v32 }
0x1117   : > { %3980 = vmatpush3.xpose.msk.msra.mxu0 %vm516_vm1, %v2726_v28  ;;  %3981 = vmatprep.mubr.msk.f32.mxu0 %vm4207_vm0, %v4206_v0 }
0x1118   : > { %3984 = vmatprep.subr.mxu0 %v4206_v0 }
0x111a   : > { %3982 = vmatmul.mubr.msk.f32.vlgmr.msra.gmra.mrb[18].mxu0 %vm516_vm1, %v2724_v33 }
0x111b   : > { %3985 = vmatpush3.xpose.msk.msra.mxu0 %vm516_vm1, %v2804_v34  ;;  %3986 = vmatprep.mubr.msk.f32.mxu0 %vm4207_vm0, %v4206_v0 }
0x111c   : > { %4004 = vmatprep.subr.mxu0 %v4206_v0 }
0x1122   : > { %3987 = vmatmul.mubr.msk.f32.vlgmr.msra.gmra.mrb[18].mxu0 %vm516_vm1, %v2802_v35 }
0x1123   : > { %4006 = vmatprep.mubr.msk.f32.mxu0 %vm4207_vm0, %v4206_v0 }
0x11e9   : > { %v4616_v36 = vpop.f32.mrb[16].mxu0 }
0x11ea   : > { %v3978_v37 = vpop.f32.mrb[17].mxu0 }
0x11f5   : > { %v2875_v38 = vpop.f32.mrb[18].mxu0 }
0x11f6   : > { %v2879_v39 = vmul.f32 0.5, %v2875_v38  ;;  %v3988_v40 = vpop.f32.mrb[19].mxu0 }
0x11f8   : > { %v2880_v43 = vadd.f32 %v4373_v20, %v2879_v39 }
0x11fa   : > { %v2881_v44 = vsel %vm677_vm2, %v2880_v43, -inf }
0x11fb   : > { %2882 = vmax.xlane.f32.xlu1 %v2881_v44 }
0x120c   : > { %2970 = vrot.lane.b32.xlu1 %v4347_v11, %s4215_s17 }
0x1210   : > { %2968 = vrot.lane.b32.xlu1 %v4351_v14, %s4215_s17 }
0x1214   : > { %3046 = vrot.lane.b32.xlu1 %v4363_v18, %s4215_s17 }
0x1218   : > { %3215 = vrot.lane.b32.xlu1 %v4347_v11, %s4222_s27 }
0x1288   : > { %v2883_v45 = vpop.xlane.xlu1 %2882 }
0x1289   : > { %v2884_v46 = vsub.f32 %v2880_v43, %v2883_v45 }
0x128b   : > { %v2885_v47 = vmul.f32 1.442695, %v2884_v46 }
0x128c   : > { %v2971_v53 = vpop.permute.xlu1 %2970 }
0x128d   : > { %4154 = vpow2.f32 %v2885_v47 }
0x1290   : > { %v2969_v56 = vpop.permute.xlu1 %2968 }
0x1294   : > { %v3047_v58 = vpop.permute.xlu1 %3046 }
0x1297   : > { %v4155_v48 = vpop.eup %4154 }
0x1298   : > { %v2887_v50 = vsel %vm677_vm2, %v4155_v48, 0.0  ;;  %v3216_v10 = vpop.permute.xlu1 %3215 }
0x1299   : > { %2888 = vadd.xlane.f32.xlu0 %v2887_v50 }
0x12af   : > { %2892 = vrot.lane.b32.xlu0 %v4393_v30, %s4221_s23 }
0x12b3   : > { %3048 = vrot.lane.b32.xlu0 %v4353_v15, %s4215_s17  ;;  %s4231_s17 = smov 12  }
0x1326   : > { %v2889_v51 = vpop.xlane.xlu0 %2888 }
0x1327   : > { %4156 = vrcp.f32 %v2889_v51 }
0x132a   : > { %v2893_v52 = vpop.permute.xlu0 %2892 }
0x132b   : > { %3990 = vmatpush3.msra.mxu1 %v2893_v52 }
0x132c   : > { %3994 = vmatprep.subr.mxu1 %v4206_v0 }
0x132e   : > { %v3049_v57 = vpop.permute.xlu0 %3048 }
0x1331   : > { %v4157_v54 = vpop.eup %4156 }
0x1332   : > { %v2891_v55 = vmul.f32 %v4157_v54, %v4155_v48 }
0x1334   : > { %3992 = vmatmul.mubr.msk.f32.vlgmr.msra.gmra.mrb[18].mxu1 %vm677_vm2, %v2891_v55 }
0x1335   : > { %3995 = vmatpush3.xpose.msk.msra.mxu1 %vm516_vm1, %v2971_v53  ;;  %3996 = vmatprep.mubr.msk.f32.mxu1 %vm4207_vm0, %v4206_v0 }
0x1336   : > { %3999 = vmatprep.subr.mxu1 %v4206_v0 }
0x1338   : > { %3997 = vmatmul.mubr.msk.f32.vlgmr.msra.gmra.mrb[20].mxu1 %vm516_vm1, %v2969_v56 }
0x1339   : > { %4000 = vmatpush3.xpose.msk.msra.mxu1 %vm516_vm1, %v3049_v57  ;;  %4001 = vmatprep.mubr.msk.f32.mxu1 %vm4207_vm0, %v4206_v0 }
0x133a   : > { %4019 = vmatprep.subr.mxu1 %v4206_v0 }
0x1340   : > { %4002 = vmatmul.mubr.msk.f32.vlgmr.msra.gmra.mrb[20].mxu1 %vm516_vm1, %v3047_v58 }
0x1341   : > { %4021 = vmatprep.mubr.msk.f32.mxu1 %vm4207_vm0, %v4206_v0 }
0x1407   : > { %v4645_v59 = vpop.f32.mrb[18].mxu1 }
0x1408   : > { %v3993_v60 = vpop.f32.mrb[19].mxu1 }
0x1413   : > { %v3120_v61 = vpop.f32.mrb[20].mxu1 }
0x1414   : > { %v3124_v63 = vmul.f32 0.5, %v3120_v61  ;;  %v4003_v1 = vpop.f32.mrb[21].mxu1 }
0x1416   : > { %v3125_v2 = vadd.f32 %v4373_v20, %v3124_v63 }
0x1418   : > { %v3126_v3 = vsel %vm677_vm2, %v3125_v2, -inf }
0x1419   : > { %3127 = vmax.xlane.f32.xlu0 %v3126_v3 }
0x142f   : > { %3137 = vrot.lane.b32.xlu0 %v4393_v30, %s4223_s24 }
0x1433   : > { %3213 = vrot.lane.b32.xlu0 %v4351_v14, %s4222_s27 }
0x1437   : > { %3291 = vrot.lane.b32.xlu0 %v4363_v18, %s4222_s27 }
0x14a6   : > { %v3128_v4 = vpop.xlane.xlu0 %3127 }
0x14a7   : > { %v3129_v11 = vsub.f32 %v3125_v2, %v3128_v4 }
0x14a9   : > { %v3130_v5 = vmul.f32 1.442695, %v3129_v11 }
0x14aa   : > { %v3138_v9 = vpop.permute.xlu0 %3137 }
0x14ab   : > { %4158 = vpow2.f32 %v3130_v5  ;;  %4005 = vmatpush3.msra.mxu0 %v3138_v9 }
0x14ac   : > { %4009 = vmatprep.subr.mxu0 %v4206_v0 }
0x14ae   : > { %v3214_v18 = vpop.permute.xlu0 %3213 }
0x14b2   : > { %v3292_v17 = vpop.permute.xlu0 %3291 }
0x14b5   : > { %v4159_v6 = vpop.eup %4158 }
0x14b6   : > { %v3132_v8 = vsel %vm677_vm2, %v4159_v6, 0.0 }
0x14b7   : > { %3133 = vadd.xlane.f32.xlu1 %v3132_v8 }
0x14c8   : > { %3293 = vrot.lane.b32.xlu1 %v4353_v15, %s4222_s27  ;;  %s495_s27 = scalar_lea.vmem %s4708_s8, %s4337_s12 }
0x1544   : > { %v3134_v12 = vpop.xlane.xlu1 %3133 }
0x1545   : > { %4160 = vrcp.f32 %v3134_v12 }
0x1548   : > { %v3294_v15 = vpop.permute.xlu1 %3293 }
0x154f   : > { %v4161_v14 = vpop.eup %4160 }
0x1550   : > { %v3136_v13 = vmul.f32 %v4161_v14, %v4159_v6 }
0x1552   : > { %4007 = vmatmul.mubr.msk.f32.vlgmr.msra.gmra.mrb[20].mxu0 %vm677_vm2, %v3136_v13 }
0x1553   : > { %4010 = vmatpush3.xpose.msk.msra.mxu0 %vm516_vm1, %v3216_v10  ;;  %4011 = vmatprep.mubr.msk.f32.mxu0 %vm4207_vm0, %v4206_v0 }
0x1554   : > { %4014 = vmatprep.subr.mxu0 %v4206_v0 }
0x1556   : > { %4012 = vmatmul.mubr.msk.f32.vlgmr.msra.gmra.mrb[22].mxu0 %vm516_vm1, %v3214_v18 }
0x1557   : > { %4015 = vmatpush3.xpose.msk.msra.mxu0 %vm516_vm1, %v3294_v15  ;;  %4016 = vmatprep.mubr.msk.f32.mxu0 %vm4207_vm0, %v4206_v0 }
0x155e   : > { %4017 = vmatmul.mubr.msk.f32.vlgmr.msra.gmra.mrb[22].mxu0 %vm516_vm1, %v3292_v17 }
0x1625   : > { %v3209_v21 = vpop.f32.mrb[20].mxu0 }
0x1626   : > { %v4008_v22 = vpop.f32.mrb[21].mxu0 }
0x1631   : > { %v3365_v23 = vpop.f32.mrb[22].mxu0 }
0x1632   : > { %v3369_v24 = vmul.f32 0.5, %v3365_v23  ;;  %v4018_v25 = vpop.f32.mrb[23].mxu0 }
0x1634   : > { %v3370_v27 = vadd.f32 %v4373_v20, %v3369_v24 }
0x1636   : > { %v3371_v28 = vsel %vm677_vm2, %v3370_v27, -inf }
0x1637   : > { %3372 = vmax.xlane.f32.xlu1 %v3371_v28 }
0x1648   : > { %3459 = vrot.lane.b32.xlu1 %v4455_v16, %s4224_s25 }
0x164c   : > { %3463 = vrot.lane.b32.xlu1 %v4457_v19, %s4225_s26 }
0x1650   : > { %3471 = vrot.lane.b32.xlu1 %v4511_v62, %s4226_s16 }
0x1654   : > { %3479 = vrot.lane.b32.xlu1 %v4564_v49, %s4227_s28 }
0x1658   : > { %3487 = vrot.lane.b32.xlu1 %v4616_v36, %s4228_s13 }
0x165c   : > { %3495 = vrot.lane.b32.xlu1 %v3209_v21, %s4229_s14 }
0x16c4   : > { %v3373_v0 = vpop.xlane.xlu1 %3372 }
0x16c5   : > { %v3374_v20 = vsub.f32 %v3370_v27, %v3373_v0 }
0x16c7   : > { %v3375_v29 = vmul.f32 1.442695, %v3374_v20 }
0x16c8   : > { %v3460_v33 = vpop.permute.xlu1 %3459 }
0x16c9   : > { %4162 = vpow2.f32 %v3375_v29  ;;  %v3503_v36 = vsel %vm3502_vm3, %v4421_v42, %v3460_v33 }
0x16d3   : > { %v4163_v31 = vpop.eup %4162 }
0x16d4   : > { %v3377_v16 = vsel %vm677_vm2, %v4163_v31, 0.0 }
0x16d5   : > { %3378 = vadd.xlane.f32.xlu0 %v3377_v16 }
0x16eb   : > { %3382 = vrot.lane.b32.xlu0 %v4393_v30, %s4230_s15 }
0x16ef   : > { %3467 = vrot.lane.b32.xlu0 %v4487_v41, %s4231_s17 }
0x16f3   : > { %3475 = vrot.lane.b32.xlu0 %v4541_v26, %s4232_s18  ;;  %v3464_v26 = vpop.permute.xlu1 %3463 }
0x16f4   : > { %v3504_v37 = vsel %vm677_vm2, %v3503_v36, %v3464_v26 }
0x16f7   : > { %3483 = vrot.lane.b32.xlu0 %v4593_v7, %s4233_s19  ;;  %v3472_v7 = vpop.permute.xlu1 %3471 }
0x16fb   : > { %3491 = vrot.lane.b32.xlu0 %v4645_v59, %s4234_s20  ;;  %v3480_v39 = vpop.permute.xlu1 %3479 }
0x16ff   : > { %v3488_v46 = vpop.permute.xlu1 %3487 }
0x1703   : > { %v3496_v51 = vpop.permute.xlu1 %3495 }
0x1762   : > { %v3379_v19 = vpop.xlane.xlu0 %3378 }
0x1763   : > { %4164 = vrcp.f32 %v3379_v19 }
0x1766   : > { %v3383_v62 = vpop.permute.xlu0 %3382 }
0x1767   : > { %4020 = vmatpush3.msra.mxu1 %v3383_v62 }
0x176a   : > { %v3468_v34 = vpop.permute.xlu0 %3467 }
0x176b   : > { %v3506_v38 = vsel %vm3505_vm4, %v3504_v37, %v3468_v34 }
0x176c   : > { %v3508_v40 = vsel %vm3507_vm5, %v3506_v38, %v3472_v7 }
0x176d   : > { %v4165_v49 = vpop.eup %4164 }
0x176e   : > { %v3381_v32 = vmul.f32 %v4165_v49, %v4163_v31  ;;  %v3476_v35 = vpop.permute.xlu0 %3475 }
0x176f   : > { %v3510_v44 = vsel %vm3509_vm6, %v3508_v40, %v3476_v35 }
0x1770   : > { %4022 = vmatmul.mubr.msk.f32.vlgmr.msra.gmra.mrb[22].mxu1 %vm677_vm2, %v3381_v32  ;;  %v3512_v45 = vsel %vm3511_vm7, %v3510_v44, %v3480_v39 }
0x1772   : > { %v3484_v43 = vpop.permute.xlu0 %3483 }
0x1773   : > { %v3514_v47 = vsel %vm3513_vm8, %v3512_v45, %v3484_v43 }
0x1774   : > { %v3516_v50 = vsel %vm3515_vm9, %v3514_v47, %v3488_v46 }
0x1776   : > { %v3492_v48 = vpop.permute.xlu0 %3491 }
0x1777   : > { %v3518_v42 = vsel %vm3517_vm10, %v3516_v50, %v3492_v48 }
0x1778   : > { %v3520_v53 = vsel %vm3519_vm11, %v3518_v42, %v3496_v51 }
0x1843   : > { %v3454_v30 = vpop.f32.mrb[22].mxu1 }
0x1844   : > { %3499 = vrot.lane.b32.xlu0 %v3454_v30, %s4235_s21  ;;  %v4023_v41 = vpop.f32.mrb[23].mxu1 }
0x18b6   : > { %v3500_v52 = vpop.permute.xlu0 %3499 }
0x18b7   : > { %v3522_v54 = vsel %vm3521_vm12, %v3520_v53, %v3500_v52 }
0x18b8   : > { %3524 = vst.msk [vmem:[%s495_s27] sm:$0xff] %vm3523_vm13, %v3522_v54 }
0x18b9 PF: > { %s18_s9 = sadd.s32 1, %s4204_s9   ;;  %s4709_s27 = smov %s4196_s29 }
0x18ba   : > { %p15_p8 = scmp.ge.s32.totalorder %s18_s9, 6   ;;  %s4710_s28 = smov %s4200_s30 }
0x18bb   : > { %s4711_s29 = smov %s4714_s10  ;;  %s4712_s30 = smov %s4718_s11 }
0x18bc   :  { %17 = sbr.rel (!%p15_p8) target bundleno = 3 (0x3), region = 97 }

</bundles_post_ra>
